<compile_context>
chip_gen: v7x
topology: tpu7x:2x2x1
jax: 0.10.0
libtpu: 0.0.40
codegen_flags: <defaults>
</compile_context>

<pallas_src>
import math

import jax
import jax.numpy as jnp
from jax.experimental import pallas as pl
from jax.experimental.pallas import tpu as pltpu

# ----------------------------- hyperparameters -----------------------------
B = 2            # batch
S = 8            # sequence length
D = 32           # model_dim
NUM_HEADS = 4    # mha_config={"num_heads": 4}
HEAD_DIM = D // NUM_HEADS
NUM_LAYERS = 3
HIDDEN = D       # hidden dim of the dense (feed-forward) network
LN_EPS = 1e-5
BS = B * S


def _layernorm_onepass(x, gamma, beta):
    """LayerNorm via sum(x)/sum(x*x): the two XLU reductions are independent."""
    inv_d = 1.0 / D
    s = jnp.sum(x, axis=-1, keepdims=True)
    ss = jnp.sum(x * x, axis=-1, keepdims=True)
    mu = s * inv_d
    var = ss * inv_d - mu * mu
    return (x - mu) * jax.lax.rsqrt(var + LN_EPS) * gamma + beta


def encoder_kernel(x_ref, w_ref, v_ref, o_ref):
    # Whole (B, S, D) batch in one step; batch fused into the matmul M dim.
    x = x_ref[...].astype(jnp.float32).reshape(BS, D)            # (BS, D) f32

    for l in range(NUM_LAYERS):                                  # unrolled
        wl = w_ref[l]                                            # (128, 96) f32
        vl = v_ref[l]                                            # (8, 128) f32

        n1w, n1b = vl[0:1, :D], vl[1:2, :D]
        qkvb = vl[2:3, :3 * D]                                   # (1, 96)
        ob = vl[3:4, :D]
        n2w, n2b = vl[4:5, :D], vl[5:6, :D]
        d1b, d2b = vl[6:7, :HIDDEN], vl[7:8, :D]

        qkvw = wl[0:D, :]                                        # (32, 96)
        ow = wl[D:2 * D, :D]                                     # (32, 32)
        d1w = wl[2 * D:3 * D, :HIDDEN]                           # (32, 32)
        d2w = wl[3 * D:3 * D + HIDDEN, :D]                       # (32, 32)

        # ---- pre-norm + fused QKV projection (single 96-lane-dense matmul) ----
        h = _layernorm_onepass(x, n1w, n1b)                      # (BS, D)
        qkv = jnp.dot(h, qkvw, preferred_element_type=jnp.float32) + qkvb  # (BS, 96)

        # ---- per-head split: static 8-lane-aligned slices, heads to major axis ----
        def heads(base):
            return jnp.stack(
                [qkv[:, base + hh * HEAD_DIM: base + (hh + 1) * HEAD_DIM]
                 for hh in range(NUM_HEADS)], axis=0)            # (H, BS, hd)

        qh = heads(0)          # 1/sqrt(hd) already folded into q weights/bias
        kh = heads(D)
        vh = heads(2 * D)

        qg = qh.reshape(NUM_HEADS * B, S, HEAD_DIM)              # major-dim regroup
        kg = kh.reshape(NUM_HEADS * B, S, HEAD_DIM)
        vg = vh.reshape(NUM_HEADS * B, S, HEAD_DIM)

        # ---- scaled dot-product attention ----
        scores = jnp.einsum('gqe,gke->gqk', qg, kg,
                            preferred_element_type=jnp.float32)  # (HB, S, S)
        m = jnp.max(scores, axis=-1, keepdims=True)
        e = jnp.exp(scores - m)
        denom = jnp.sum(e, axis=-1, keepdims=True)
        probs = e * pl.reciprocal(denom, approx=True)            # EUP slot

        og = jnp.einsum('gqk,gke->gqe', probs, vg,
                        preferred_element_type=jnp.float32)      # (HB, S, hd)
        oh = og.reshape(NUM_HEADS, BS, HEAD_DIM)                 # (H, BS, hd)

        # ---- merge heads into lanes + output projection (head-sum inside MXU) ----
        a2d = jnp.concatenate([oh[hh] for hh in range(NUM_HEADS)], axis=-1)  # (BS, D)
        x = x + jnp.dot(a2d, ow, preferred_element_type=jnp.float32) + ob

        # ---- pre-norm + dense network + residual ----
        h2 = _layernorm_onepass(x, n2w, n2b)
        z = jnp.dot(h2, d1w, preferred_element_type=jnp.float32) + d1b
        z = jnp.maximum(z, 0.1 * z)                              # LeakyReLU(0.1)
        z = jnp.dot(z, d2w, preferred_element_type=jnp.float32) + d2b
        x = x + z

    # ---- final layer norm ----
    vf = v_ref[NUM_LAYERS]
    x = _layernorm_onepass(x, vf[0:1, :D], vf[1:2, :D])
    o_ref[...] = x.reshape(B, S, D).astype(o_ref.dtype)


def transformer_encoder(x, params):
    """x: (B, S, D) float32 -> (B, S, D) float32."""
    L = NUM_LAYERS
    inv_sqrt_hd = 1.0 / math.sqrt(HEAD_DIM)

    # Fold 1/sqrt(head_dim) into the q columns of the fused QKV projection.
    qkvw = params["qkvw"].at[:, :, :D].multiply(inv_sqrt_hd)     # (L, D, 3D)
    qkvb = params["qkvb"][:, 0, :].at[:, :D].multiply(inv_sqrt_hd)  # (L, 3D)

    # --- weight blob: (L, 128, 96) f32 ---
    wblob = jnp.zeros((L, 4 * D, 3 * D), jnp.float32)
    wblob = wblob.at[:, 0:D, :].set(qkvw)
    wblob = wblob.at[:, D:2 * D, :D].set(params["ow"])
    wblob = wblob.at[:, 2 * D:3 * D, :HIDDEN].set(params["d1w"])
    wblob = wblob.at[:, 3 * D:3 * D + HIDDEN, :D].set(params["d2w"])

    # --- vector blob (biases / norm params): (L+1, 8, 128) f32 ---
    vblob = jnp.zeros((L + 1, 8, 128), jnp.float32)
    vblob = vblob.at[:L, 0, :D].set(params["n1w"][:, 0, :])
    vblob = vblob.at[:L, 1, :D].set(params["n1b"][:, 0, :])
    vblob = vblob.at[:L, 2, :3 * D].set(qkvb)
    vblob = vblob.at[:L, 3, :D].set(params["ob"][:, 0, :])
    vblob = vblob.at[:L, 4, :D].set(params["n2w"][:, 0, :])
    vblob = vblob.at[:L, 5, :D].set(params["n2b"][:, 0, :])
    vblob = vblob.at[:L, 6, :HIDDEN].set(params["d1b"][:, 0, :])
    vblob = vblob.at[:L, 7, :D].set(params["d2b"][:, 0, :])
    vblob = vblob.at[L, 0, :D].set(params["fnw"][0])
    vblob = vblob.at[L, 1, :D].set(params["fnb"][0])

    vmem = pltpu.MemorySpace.VMEM
    return pl.pallas_call(
        encoder_kernel,
        out_shape=jax.ShapeDtypeStruct((B, S, D), x.dtype),
        in_specs=[pl.BlockSpec(memory_space=vmem)] * 3,
        out_specs=pl.BlockSpec(memory_space=vmem),
    )(x, wblob, vblob)


# ----------------------------- pure-JAX reference -----------------------------
def _layernorm_ref(x, gamma, beta):
    mu = jnp.mean(x, axis=-1, keepdims=True)
    var = jnp.mean((x - mu) ** 2, axis=-1, keepdims=True)
    return (x - mu) * jax.lax.rsqrt(var + LN_EPS) * gamma + beta


def reference_encoder(x, params):
    x = x.astype(jnp.float32)
    for l in range(NUM_LAYERS):
        h = _layernorm_ref(x, params["n1w"][l], params["n1b"][l])
        qkv = jnp.einsum("bsd,de->bse", h, params["qkvw"][l]) + params["qkvb"][l]
        q, k, v = jnp.split(qkv, 3, axis=-1)

        def split_heads(t):
            return t.reshape(B, S, NUM_HEADS, HEAD_DIM).transpose(0, 2, 1, 3)

        qh, kh, vh = split_heads(q), split_heads(k), split_heads(v)
        scores = jnp.einsum("bhqd,bhkd->bhqk", qh, kh) / math.sqrt(HEAD_DIM)
        probs = jax.nn.softmax(scores, axis=-1)
        a = jnp.einsum("bhqk,bhkd->bhqd", probs, vh)
        a = a.transpose(0, 2, 1, 3).reshape(B, S, D)
        attn = jnp.einsum("bsd,de->bse", a, params["ow"][l]) + params["ob"][l]
        x = x + attn
        h2 = _layernorm_ref(x, params["n2w"][l], params["n2b"][l])
        z = jnp.einsum("bsd,dh->bsh", h2, params["d1w"][l]) + params["d1b"][l]
        z = jnp.where(z > 0, z, 0.1 * z)
        z = jnp.einsum("bsh,hd->bsd", z, params["d2w"][l]) + params["d2b"][l]
        x = x + z
    return _layernorm_ref(x, params["fnw"], params["fnb"])


# ----------------------------- parameter init -----------------------------
def init_params(key):
    ks = jax.random.split(key, 8)
    scale = 0.05
    params = {
        # layer norms: ones / zeros (PyTorch default init)
        "n1w": jnp.ones((NUM_LAYERS, 1, D), jnp.float32),
        "n1b": jnp.zeros((NUM_LAYERS, 1, D), jnp.float32),
        "n2w": jnp.ones((NUM_LAYERS, 1, D), jnp.float32),
        "n2b": jnp.zeros((NUM_LAYERS, 1, D), jnp.float32),
        "fnw": jnp.ones((1, D), jnp.float32),
        "fnb": jnp.zeros((1, D), jnp.float32),
        # fused self-attention QKV projection (all_linear)
        "qkvw": scale * jax.random.normal(ks[0], (NUM_LAYERS, D, 3 * D), jnp.float32),
        "qkvb": scale * jax.random.normal(ks[1], (NUM_LAYERS, 1, 3 * D), jnp.float32),
        # attention output projection
        "ow": scale * jax.random.normal(ks[2], (NUM_LAYERS, D, D), jnp.float32),
        "ob": scale * jax.random.normal(ks[3], (NUM_LAYERS, 1, D), jnp.float32),
        # dense network
        "d1w": scale * jax.random.normal(ks[4], (NUM_LAYERS, D, HIDDEN), jnp.float32),
        "d1b": scale * jax.random.normal(ks[5], (NUM_LAYERS, 1, HIDDEN), jnp.float32),
        "d2w": scale * jax.random.normal(ks[6], (NUM_LAYERS, HIDDEN, D), jnp.float32),
        "d2b": scale * jax.random.normal(ks[7], (NUM_LAYERS, 1, D), jnp.float32),
    }
    return params


if __name__ == "__main__":
    key = jax.random.PRNGKey(0)
    k_x, k_p = jax.random.split(key)
    x = jax.random.normal(k_x, (B, S, D), jnp.float32)
    params = init_params(k_p)

    out = transformer_encoder(x, params)
    out = jax.block_until_ready(out)

    ref = reference_encoder(x, params)
    assert out.shape == (B, S, D)
    # All-f32 math; only the approx reciprocal in the softmax denominator deviates.
    assert jnp.allclose(out, ref, atol=5e-3, rtol=5e-3), \
        f"max abs err {jnp.max(jnp.abs(out - ref))}"

    print("KERNEL_OK")
</pallas_src>

<mosaic_0001>
module attributes {stable_mosaic.version = 11 : i64} {
  func.func @encoder_kernel(%arg0: memref<2x8x32xf32, #tpu.memory_space<vmem>>, %arg1: memref<3x128x96xf32, #tpu.memory_space<vmem>>, %arg2: memref<4x8x128xf32, #tpu.memory_space<vmem>>, %arg3: memref<2x8x32xf32, #tpu.memory_space<vmem>>) attributes {dimension_semantics = [], scalar_prefetch = 0 : i64, scratch_operands = 0 : i64, tpu.core_type = #tpu.core_type<tc>} {
    %c0 = arith.constant 0 : index
    %c0_0 = arith.constant 0 : index
    %c0_1 = arith.constant 0 : index
    %0 = vector.load %arg0[%c0, %c0_0, %c0_1] : memref<2x8x32xf32, #tpu.memory_space<vmem>>, vector<2x8x32xf32>
    %1 = vector.shape_cast %0 : vector<2x8x32xf32> to vector<16x32xf32>
    %c0_2 = arith.constant 0 : index
    %c0_3 = arith.constant 0 : index
    %c0_4 = arith.constant 0 : index
    %2 = vector.load %arg1[%c0_2, %c0_3, %c0_4] : memref<3x128x96xf32, #tpu.memory_space<vmem>>, vector<1x128x96xf32>
    %3 = vector.shape_cast %2 : vector<1x128x96xf32> to vector<128x96xf32>
    %c0_5 = arith.constant 0 : index
    %c0_6 = arith.constant 0 : index
    %c0_7 = arith.constant 0 : index
    %4 = vector.load %arg2[%c0_5, %c0_6, %c0_7] : memref<4x8x128xf32, #tpu.memory_space<vmem>>, vector<1x8x128xf32>
    %5 = vector.shape_cast %4 : vector<1x8x128xf32> to vector<8x128xf32>
    %6 = vector.extract_strided_slice %5 {offsets = [0, 0], sizes = [1, 32], strides = [1, 1]} : vector<8x128xf32> to vector<1x32xf32>
    %7 = vector.extract_strided_slice %5 {offsets = [1, 0], sizes = [1, 32], strides = [1, 1]} : vector<8x128xf32> to vector<1x32xf32>
    %8 = vector.extract_strided_slice %5 {offsets = [2, 0], sizes = [1, 96], strides = [1, 1]} : vector<8x128xf32> to vector<1x96xf32>
    %9 = vector.extract_strided_slice %5 {offsets = [3, 0], sizes = [1, 32], strides = [1, 1]} : vector<8x128xf32> to vector<1x32xf32>
    %10 = vector.extract_strided_slice %5 {offsets = [4, 0], sizes = [1, 32], strides = [1, 1]} : vector<8x128xf32> to vector<1x32xf32>
    %11 = vector.extract_strided_slice %5 {offsets = [5, 0], sizes = [1, 32], strides = [1, 1]} : vector<8x128xf32> to vector<1x32xf32>
    %12 = vector.extract_strided_slice %5 {offsets = [6, 0], sizes = [1, 32], strides = [1, 1]} : vector<8x128xf32> to vector<1x32xf32>
    %13 = vector.extract_strided_slice %5 {offsets = [7, 0], sizes = [1, 32], strides = [1, 1]} : vector<8x128xf32> to vector<1x32xf32>
    %14 = vector.extract_strided_slice %3 {offsets = [0, 0], sizes = [32, 96], strides = [1, 1]} : vector<128x96xf32> to vector<32x96xf32>
    %15 = vector.extract_strided_slice %3 {offsets = [32, 0], sizes = [32, 32], strides = [1, 1]} : vector<128x96xf32> to vector<32x32xf32>
    %16 = vector.extract_strided_slice %3 {offsets = [64, 0], sizes = [32, 32], strides = [1, 1]} : vector<128x96xf32> to vector<32x32xf32>
    %17 = vector.extract_strided_slice %3 {offsets = [96, 0], sizes = [32, 32], strides = [1, 1]} : vector<128x96xf32> to vector<32x32xf32>
    %cst = arith.constant dense<0.000000e+00> : vector<16xf32>
    %18 = vector.multi_reduction <add>, %1, %cst [1] : vector<16x32xf32> to vector<16xf32>
    %19 = vector.shape_cast %18 : vector<16xf32> to vector<16x1xf32>
    %20 = arith.mulf %1, %1 : vector<16x32xf32>
    %cst_8 = arith.constant dense<0.000000e+00> : vector<16xf32>
    %21 = vector.multi_reduction <add>, %20, %cst_8 [1] : vector<16x32xf32> to vector<16xf32>
    %22 = vector.shape_cast %21 : vector<16xf32> to vector<16x1xf32>
    %cst_9 = arith.constant 3.125000e-02 : f32
    %23 = vector.broadcast %cst_9 : f32 to vector<16x1xf32>
    %24 = arith.mulf %19, %23 : vector<16x1xf32>
    %cst_10 = arith.constant 3.125000e-02 : f32
    %25 = vector.broadcast %cst_10 : f32 to vector<16x1xf32>
    %26 = arith.mulf %22, %25 : vector<16x1xf32>
    %27 = arith.mulf %24, %24 : vector<16x1xf32>
    %28 = arith.subf %26, %27 : vector<16x1xf32>
    %29 = vector.broadcast %24 : vector<16x1xf32> to vector<16x32xf32>
    %30 = arith.subf %1, %29 : vector<16x32xf32>
    %cst_11 = arith.constant 9.99999974E-6 : f32
    %31 = vector.broadcast %cst_11 : f32 to vector<16x1xf32>
    %32 = arith.addf %28, %31 : vector<16x1xf32>
    %33 = math.rsqrt %32 : vector<16x1xf32>
    %34 = vector.broadcast %33 : vector<16x1xf32> to vector<16x32xf32>
    %35 = arith.mulf %30, %34 : vector<16x32xf32>
    %36 = vector.broadcast %6 : vector<1x32xf32> to vector<16x32xf32>
    %37 = arith.mulf %35, %36 : vector<16x32xf32>
    %38 = vector.broadcast %7 : vector<1x32xf32> to vector<16x32xf32>
    %39 = arith.addf %37, %38 : vector<16x32xf32>
    %cst_12 = arith.constant dense<0.000000e+00> : vector<16x96xf32>
    %40 = tpu.matmul %39, %14, %cst_12 {dimension_numbers = #tpu.dot_dimension_numbers<[1], [0], [0], [1], [0, 0, 1, 1], [], []>} : vector<16x32xf32>, vector<32x96xf32>, vector<16x96xf32> -> vector<16x96xf32>
    %41 = vector.broadcast %8 : vector<1x96xf32> to vector<16x96xf32>
    %42 = arith.addf %40, %41 : vector<16x96xf32>
    %43 = vector.extract_strided_slice %42 {offsets = [0, 0], sizes = [16, 8], strides = [1, 1]} : vector<16x96xf32> to vector<16x8xf32>
    %44 = vector.extract_strided_slice %42 {offsets = [0, 8], sizes = [16, 8], strides = [1, 1]} : vector<16x96xf32> to vector<16x8xf32>
    %45 = vector.extract_strided_slice %42 {offsets = [0, 16], sizes = [16, 8], strides = [1, 1]} : vector<16x96xf32> to vector<16x8xf32>
    %46 = vector.extract_strided_slice %42 {offsets = [0, 24], sizes = [16, 8], strides = [1, 1]} : vector<16x96xf32> to vector<16x8xf32>
    %47 = vector.shape_cast %43 : vector<16x8xf32> to vector<1x16x8xf32>
    %48 = vector.shape_cast %44 : vector<16x8xf32> to vector<1x16x8xf32>
    %49 = vector.shape_cast %45 : vector<16x8xf32> to vector<1x16x8xf32>
    %50 = vector.shape_cast %46 : vector<16x8xf32> to vector<1x16x8xf32>
    %51 = tpu.concatenate %47, %48, %49, %50 in 0 : vector<1x16x8xf32>, vector<1x16x8xf32>, vector<1x16x8xf32>, vector<1x16x8xf32> -> vector<4x16x8xf32>
    %52 = vector.extract_strided_slice %42 {offsets = [0, 32], sizes = [16, 8], strides = [1, 1]} : vector<16x96xf32> to vector<16x8xf32>
    %53 = vector.extract_strided_slice %42 {offsets = [0, 40], sizes = [16, 8], strides = [1, 1]} : vector<16x96xf32> to vector<16x8xf32>
    %54 = vector.extract_strided_slice %42 {offsets = [0, 48], sizes = [16, 8], strides = [1, 1]} : vector<16x96xf32> to vector<16x8xf32>
    %55 = vector.extract_strided_slice %42 {offsets = [0, 56], sizes = [16, 8], strides = [1, 1]} : vector<16x96xf32> to vector<16x8xf32>
    %56 = vector.shape_cast %52 : vector<16x8xf32> to vector<1x16x8xf32>
    %57 = vector.shape_cast %53 : vector<16x8xf32> to vector<1x16x8xf32>
    %58 = vector.shape_cast %54 : vector<16x8xf32> to vector<1x16x8xf32>
    %59 = vector.shape_cast %55 : vector<16x8xf32> to vector<1x16x8xf32>
    %60 = tpu.concatenate %56, %57, %58, %59 in 0 : vector<1x16x8xf32>, vector<1x16x8xf32>, vector<1x16x8xf32>, vector<1x16x8xf32> -> vector<4x16x8xf32>
    %61 = vector.extract_strided_slice %42 {offsets = [0, 64], sizes = [16, 8], strides = [1, 1]} : vector<16x96xf32> to vector<16x8xf32>
    %62 = vector.extract_strided_slice %42 {offsets = [0, 72], sizes = [16, 8], strides = [1, 1]} : vector<16x96xf32> to vector<16x8xf32>
    %63 = vector.extract_strided_slice %42 {offsets = [0, 80], sizes = [16, 8], strides = [1, 1]} : vector<16x96xf32> to vector<16x8xf32>
    %64 = vector.extract_strided_slice %42 {offsets = [0, 88], sizes = [16, 8], strides = [1, 1]} : vector<16x96xf32> to vector<16x8xf32>
    %65 = vector.shape_cast %61 : vector<16x8xf32> to vector<1x16x8xf32>
    %66 = vector.shape_cast %62 : vector<16x8xf32> to vector<1x16x8xf32>
    %67 = vector.shape_cast %63 : vector<16x8xf32> to vector<1x16x8xf32>
    %68 = vector.shape_cast %64 : vector<16x8xf32> to vector<1x16x8xf32>
    %69 = tpu.concatenate %65, %66, %67, %68 in 0 : vector<1x16x8xf32>, vector<1x16x8xf32>, vector<1x16x8xf32>, vector<1x16x8xf32> -> vector<4x16x8xf32>
    %70 = vector.shape_cast %51 : vector<4x16x8xf32> to vector<8x8x8xf32>
    %71 = vector.shape_cast %60 : vector<4x16x8xf32> to vector<8x8x8xf32>
    %72 = vector.shape_cast %69 : vector<4x16x8xf32> to vector<8x8x8xf32>
    "tpu.trace_start"() <{level = 10 : i32, message = "gqe,gke->gqk"}> : () -> ()
    %cst_13 = arith.constant dense<0.000000e+00> : vector<8x8x8xf32>
    %73 = tpu.matmul %70, %71, %cst_13 {dimension_numbers = #tpu.dot_dimension_numbers<[2], [2], [1], [1], [0, 0, 0, 1, 1, 1], [0], [0]>} : vector<8x8x8xf32>, vector<8x8x8xf32>, vector<8x8x8xf32> -> vector<8x8x8xf32>
    "tpu.trace_stop"() : () -> ()
    %cst_14 = arith.constant dense<0xFF800000> : vector<8x8xf32>
    %74 = vector.multi_reduction <maximumf>, %73, %cst_14 [2] : vector<8x8x8xf32> to vector<8x8xf32>
    %75 = vector.shape_cast %74 : vector<8x8xf32> to vector<8x8x1xf32>
    %76 = vector.broadcast %75 : vector<8x8x1xf32> to vector<8x8x8xf32>
    %77 = arith.subf %73, %76 : vector<8x8x8xf32>
    %78 = math.exp %77 : vector<8x8x8xf32>
    %cst_15 = arith.constant dense<0.000000e+00> : vector<8x8xf32>
    %79 = vector.multi_reduction <add>, %78, %cst_15 [2] : vector<8x8x8xf32> to vector<8x8xf32>
    %80 = vector.shape_cast %79 : vector<8x8xf32> to vector<8x8x1xf32>
    %81 = tpu.reciprocal %80 {approx = true} : vector<8x8x1xf32> -> vector<8x8x1xf32>
    %82 = vector.broadcast %81 : vector<8x8x1xf32> to vector<8x8x8xf32>
    %83 = arith.mulf %78, %82 : vector<8x8x8xf32>
    "tpu.trace_start"() <{level = 10 : i32, message = "gqk,gke->gqe"}> : () -> ()
    %cst_16 = arith.constant dense<0.000000e+00> : vector<8x8x8xf32>
    %84 = tpu.matmul %83, %72, %cst_16 {dimension_numbers = #tpu.dot_dimension_numbers<[2], [1], [1], [2], [0, 0, 0, 1, 1, 2], [0], [0]>} : vector<8x8x8xf32>, vector<8x8x8xf32>, vector<8x8x8xf32> -> vector<8x8x8xf32>
    "tpu.trace_stop"() : () -> ()
    %85 = vector.shape_cast %84 : vector<8x8x8xf32> to vector<4x16x8xf32>
    %86 = vector.extract_strided_slice %85 {offsets = [0, 0, 0], sizes = [1, 16, 8], strides = [1, 1, 1]} : vector<4x16x8xf32> to vector<1x16x8xf32>
    %87 = vector.shape_cast %86 : vector<1x16x8xf32> to vector<16x8xf32>
    %88 = vector.extract_strided_slice %85 {offsets = [1, 0, 0], sizes = [1, 16, 8], strides = [1, 1, 1]} : vector<4x16x8xf32> to vector<1x16x8xf32>
    %89 = vector.shape_cast %88 : vector<1x16x8xf32> to vector<16x8xf32>
    %90 = vector.extract_strided_slice %85 {offsets = [2, 0, 0], sizes = [1, 16, 8], strides = [1, 1, 1]} : vector<4x16x8xf32> to vector<1x16x8xf32>
    %91 = vector.shape_cast %90 : vector<1x16x8xf32> to vector<16x8xf32>
    %92 = vector.extract_strided_slice %85 {offsets = [3, 0, 0], sizes = [1, 16, 8], strides = [1, 1, 1]} : vector<4x16x8xf32> to vector<1x16x8xf32>
    %93 = vector.shape_cast %92 : vector<1x16x8xf32> to vector<16x8xf32>
    %94 = tpu.concatenate %87, %89, %91, %93 in 1 : vector<16x8xf32>, vector<16x8xf32>, vector<16x8xf32>, vector<16x8xf32> -> vector<16x32xf32>
    %cst_17 = arith.constant dense<0.000000e+00> : vector<16x32xf32>
    %95 = tpu.matmul %94, %15, %cst_17 {dimension_numbers = #tpu.dot_dimension_numbers<[1], [0], [0], [1], [0, 0, 1, 1], [], []>} : vector<16x32xf32>, vector<32x32xf32>, vector<16x32xf32> -> vector<16x32xf32>
    %96 = arith.addf %1, %95 : vector<16x32xf32>
    %97 = vector.broadcast %9 : vector<1x32xf32> to vector<16x32xf32>
    %98 = arith.addf %96, %97 : vector<16x32xf32>
    %cst_18 = arith.constant dense<0.000000e+00> : vector<16xf32>
    %99 = vector.multi_reduction <add>, %98, %cst_18 [1] : vector<16x32xf32> to vector<16xf32>
    %100 = vector.shape_cast %99 : vector<16xf32> to vector<16x1xf32>
    %101 = arith.mulf %98, %98 : vector<16x32xf32>
    %cst_19 = arith.constant dense<0.000000e+00> : vector<16xf32>
    %102 = vector.multi_reduction <add>, %101, %cst_19 [1] : vector<16x32xf32> to vector<16xf32>
    %103 = vector.shape_cast %102 : vector<16xf32> to vector<16x1xf32>
    %cst_20 = arith.constant 3.125000e-02 : f32
    %104 = vector.broadcast %cst_20 : f32 to vector<16x1xf32>
    %105 = arith.mulf %100, %104 : vector<16x1xf32>
    %cst_21 = arith.constant 3.125000e-02 : f32
    %106 = vector.broadcast %cst_21 : f32 to vector<16x1xf32>
    %107 = arith.mulf %103, %106 : vector<16x1xf32>
    %108 = arith.mulf %105, %105 : vector<16x1xf32>
    %109 = arith.subf %107, %108 : vector<16x1xf32>
    %110 = vector.broadcast %105 : vector<16x1xf32> to vector<16x32xf32>
    %111 = arith.subf %98, %110 : vector<16x32xf32>
    %cst_22 = arith.constant 9.99999974E-6 : f32
    %112 = vector.broadcast %cst_22 : f32 to vector<16x1xf32>
    %113 = arith.addf %109, %112 : vector<16x1xf32>
    %114 = math.rsqrt %113 : vector<16x1xf32>
    %115 = vector.broadcast %114 : vector<16x1xf32> to vector<16x32xf32>
    %116 = arith.mulf %111, %115 : vector<16x32xf32>
    %117 = vector.broadcast %10 : vector<1x32xf32> to vector<16x32xf32>
    %118 = arith.mulf %116, %117 : vector<16x32xf32>
    %119 = vector.broadcast %11 : vector<1x32xf32> to vector<16x32xf32>
    %120 = arith.addf %118, %119 : vector<16x32xf32>
    %cst_23 = arith.constant dense<0.000000e+00> : vector<16x32xf32>
    %121 = tpu.matmul %120, %16, %cst_23 {dimension_numbers = #tpu.dot_dimension_numbers<[1], [0], [0], [1], [0, 0, 1, 1], [], []>} : vector<16x32xf32>, vector<32x32xf32>, vector<16x32xf32> -> vector<16x32xf32>
    %122 = vector.broadcast %12 : vector<1x32xf32> to vector<16x32xf32>
    %123 = arith.addf %121, %122 : vector<16x32xf32>
    %cst_24 = arith.constant 1.000000e-01 : f32
    %124 = vector.broadcast %cst_24 : f32 to vector<16x32xf32>
    %125 = arith.mulf %124, %123 : vector<16x32xf32>
    %126 = arith.maximumf %123, %125 : vector<16x32xf32>
    %cst_25 = arith.constant dense<0.000000e+00> : vector<16x32xf32>
    %127 = tpu.matmul %126, %17, %cst_25 {dimension_numbers = #tpu.dot_dimension_numbers<[1], [0], [0], [1], [0, 0, 1, 1], [], []>} : vector<16x32xf32>, vector<32x32xf32>, vector<16x32xf32> -> vector<16x32xf32>
    %128 = vector.broadcast %13 : vector<1x32xf32> to vector<16x32xf32>
    %129 = arith.addf %127, %128 : vector<16x32xf32>
    %130 = arith.addf %98, %129 : vector<16x32xf32>
    %c1 = arith.constant 1 : index
    %c0_26 = arith.constant 0 : index
    %c0_27 = arith.constant 0 : index
    %131 = vector.load %arg1[%c1, %c0_26, %c0_27] : memref<3x128x96xf32, #tpu.memory_space<vmem>>, vector<1x128x96xf32>
    %132 = vector.shape_cast %131 : vector<1x128x96xf32> to vector<128x96xf32>
    %c1_28 = arith.constant 1 : index
    %c0_29 = arith.constant 0 : index
    %c0_30 = arith.constant 0 : index
    %133 = vector.load %arg2[%c1_28, %c0_29, %c0_30] : memref<4x8x128xf32, #tpu.memory_space<vmem>>, vector<1x8x128xf32>
    %134 = vector.shape_cast %133 : vector<1x8x128xf32> to vector<8x128xf32>
    %135 = vector.extract_strided_slice %134 {offsets = [0, 0], sizes = [1, 32], strides = [1, 1]} : vector<8x128xf32> to vector<1x32xf32>
    %136 = vector.extract_strided_slice %134 {offsets = [1, 0], sizes = [1, 32], strides = [1, 1]} : vector<8x128xf32> to vector<1x32xf32>
    %137 = vector.extract_strided_slice %134 {offsets = [2, 0], sizes = [1, 96], strides = [1, 1]} : vector<8x128xf32> to vector<1x96xf32>
    %138 = vector.extract_strided_slice %134 {offsets = [3, 0], sizes = [1, 32], strides = [1, 1]} : vector<8x128xf32> to vector<1x32xf32>
    %139 = vector.extract_strided_slice %134 {offsets = [4, 0], sizes = [1, 32], strides = [1, 1]} : vector<8x128xf32> to vector<1x32xf32>
    %140 = vector.extract_strided_slice %134 {offsets = [5, 0], sizes = [1, 32], strides = [1, 1]} : vector<8x128xf32> to vector<1x32xf32>
    %141 = vector.extract_strided_slice %134 {offsets = [6, 0], sizes = [1, 32], strides = [1, 1]} : vector<8x128xf32> to vector<1x32xf32>
    %142 = vector.extract_strided_slice %134 {offsets = [7, 0], sizes = [1, 32], strides = [1, 1]} : vector<8x128xf32> to vector<1x32xf32>
    %143 = vector.extract_strided_slice %132 {offsets = [0, 0], sizes = [32, 96], strides = [1, 1]} : vector<128x96xf32> to vector<32x96xf32>
    %144 = vector.extract_strided_slice %132 {offsets = [32, 0], sizes = [32, 32], strides = [1, 1]} : vector<128x96xf32> to vector<32x32xf32>
    %145 = vector.extract_strided_slice %132 {offsets = [64, 0], sizes = [32, 32], strides = [1, 1]} : vector<128x96xf32> to vector<32x32xf32>
    %146 = vector.extract_strided_slice %132 {offsets = [96, 0], sizes = [32, 32], strides = [1, 1]} : vector<128x96xf32> to vector<32x32xf32>
    %cst_31 = arith.constant dense<0.000000e+00> : vector<16xf32>
    %147 = vector.multi_reduction <add>, %130, %cst_31 [1] : vector<16x32xf32> to vector<16xf32>
    %148 = vector.shape_cast %147 : vector<16xf32> to vector<16x1xf32>
    %149 = arith.mulf %130, %130 : vector<16x32xf32>
    %cst_32 = arith.constant dense<0.000000e+00> : vector<16xf32>
    %150 = vector.multi_reduction <add>, %149, %cst_32 [1] : vector<16x32xf32> to vector<16xf32>
    %151 = vector.shape_cast %150 : vector<16xf32> to vector<16x1xf32>
    %cst_33 = arith.constant 3.125000e-02 : f32
    %152 = vector.broadcast %cst_33 : f32 to vector<16x1xf32>
    %153 = arith.mulf %148, %152 : vector<16x1xf32>
    %cst_34 = arith.constant 3.125000e-02 : f32
    %154 = vector.broadcast %cst_34 : f32 to vector<16x1xf32>
    %155 = arith.mulf %151, %154 : vector<16x1xf32>
    %156 = arith.mulf %153, %153 : vector<16x1xf32>
    %157 = arith.subf %155, %156 : vector<16x1xf32>
    %158 = vector.broadcast %153 : vector<16x1xf32> to vector<16x32xf32>
    %159 = arith.subf %130, %158 : vector<16x32xf32>
    %cst_35 = arith.constant 9.99999974E-6 : f32
    %160 = vector.broadcast %cst_35 : f32 to vector<16x1xf32>
    %161 = arith.addf %157, %160 : vector<16x1xf32>
    %162 = math.rsqrt %161 : vector<16x1xf32>
    %163 = vector.broadcast %162 : vector<16x1xf32> to vector<16x32xf32>
    %164 = arith.mulf %159, %163 : vector<16x32xf32>
    %165 = vector.broadcast %135 : vector<1x32xf32> to vector<16x32xf32>
    %166 = arith.mulf %164, %165 : vector<16x32xf32>
    %167 = vector.broadcast %136 : vector<1x32xf32> to vector<16x32xf32>
    %168 = arith.addf %166, %167 : vector<16x32xf32>
    %cst_36 = arith.constant dense<0.000000e+00> : vector<16x96xf32>
    %169 = tpu.matmul %168, %143, %cst_36 {dimension_numbers = #tpu.dot_dimension_numbers<[1], [0], [0], [1], [0, 0, 1, 1], [], []>} : vector<16x32xf32>, vector<32x96xf32>, vector<16x96xf32> -> vector<16x96xf32>
    %170 = vector.broadcast %137 : vector<1x96xf32> to vector<16x96xf32>
    %171 = arith.addf %169, %170 : vector<16x96xf32>
    %172 = vector.extract_strided_slice %171 {offsets = [0, 0], sizes = [16, 8], strides = [1, 1]} : vector<16x96xf32> to vector<16x8xf32>
    %173 = vector.extract_strided_slice %171 {offsets = [0, 8], sizes = [16, 8], strides = [1, 1]} : vector<16x96xf32> to vector<16x8xf32>
    %174 = vector.extract_strided_slice %171 {offsets = [0, 16], sizes = [16, 8], strides = [1, 1]} : vector<16x96xf32> to vector<16x8xf32>
    %175 = vector.extract_strided_slice %171 {offsets = [0, 24], sizes = [16, 8], strides = [1, 1]} : vector<16x96xf32> to vector<16x8xf32>
    %176 = vector.shape_cast %172 : vector<16x8xf32> to vector<1x16x8xf32>
    %177 = vector.shape_cast %173 : vector<16x8xf32> to vector<1x16x8xf32>
    %178 = vector.shape_cast %174 : vector<16x8xf32> to vector<1x16x8xf32>
    %179 = vector.shape_cast %175 : vector<16x8xf32> to vector<1x16x8xf32>
    %180 = tpu.concatenate %176, %177, %178, %179 in 0 : vector<1x16x8xf32>, vector<1x16x8xf32>, vector<1x16x8xf32>, vector<1x16x8xf32> -> vector<4x16x8xf32>
    %181 = vector.extract_strided_slice %171 {offsets = [0, 32], sizes = [16, 8], strides = [1, 1]} : vector<16x96xf32> to vector<16x8xf32>
    %182 = vector.extract_strided_slice %171 {offsets = [0, 40], sizes = [16, 8], strides = [1, 1]} : vector<16x96xf32> to vector<16x8xf32>
    %183 = vector.extract_strided_slice %171 {offsets = [0, 48], sizes = [16, 8], strides = [1, 1]} : vector<16x96xf32> to vector<16x8xf32>
    %184 = vector.extract_strided_slice %171 {offsets = [0, 56], sizes = [16, 8], strides = [1, 1]} : vector<16x96xf32> to vector<16x8xf32>
    %185 = vector.shape_cast %181 : vector<16x8xf32> to vector<1x16x8xf32>
    %186 = vector.shape_cast %182 : vector<16x8xf32> to vector<1x16x8xf32>
    %187 = vector.shape_cast %183 : vector<16x8xf32> to vector<1x16x8xf32>
    %188 = vector.shape_cast %184 : vector<16x8xf32> to vector<1x16x8xf32>
    %189 = tpu.concatenate %185, %186, %187, %188 in 0 : vector<1x16x8xf32>, vector<1x16x8xf32>, vector<1x16x8xf32>, vector<1x16x8xf32> -> vector<4x16x8xf32>
    %190 = vector.extract_strided_slice %171 {offsets = [0, 64], sizes = [16, 8], strides = [1, 1]} : vector<16x96xf32> to vector<16x8xf32>
    %191 = vector.extract_strided_slice %171 {offsets = [0, 72], sizes = [16, 8], strides = [1, 1]} : vector<16x96xf32> to vector<16x8xf32>
    %192 = vector.extract_strided_slice %171 {offsets = [0, 80], sizes = [16, 8], strides = [1, 1]} : vector<16x96xf32> to vector<16x8xf32>
    %193 = vector.extract_strided_slice %171 {offsets = [0, 88], sizes = [16, 8], strides = [1, 1]} : vector<16x96xf32> to vector<16x8xf32>
    %194 = vector.shape_cast %190 : vector<16x8xf32> to vector<1x16x8xf32>
    %195 = vector.shape_cast %191 : vector<16x8xf32> to vector<1x16x8xf32>
    %196 = vector.shape_cast %192 : vector<16x8xf32> to vector<1x16x8xf32>
    %197 = vector.shape_cast %193 : vector<16x8xf32> to vector<1x16x8xf32>
    %198 = tpu.concatenate %194, %195, %196, %197 in 0 : vector<1x16x8xf32>, vector<1x16x8xf32>, vector<1x16x8xf32>, vector<1x16x8xf32> -> vector<4x16x8xf32>
    %199 = vector.shape_cast %180 : vector<4x16x8xf32> to vector<8x8x8xf32>
    %200 = vector.shape_cast %189 : vector<4x16x8xf32> to vector<8x8x8xf32>
    %201 = vector.shape_cast %198 : vector<4x16x8xf32> to vector<8x8x8xf32>
    "tpu.trace_start"() <{level = 10 : i32, message = "gqe,gke->gqk"}> : () -> ()
    %cst_37 = arith.constant dense<0.000000e+00> : vector<8x8x8xf32>
    %202 = tpu.matmul %199, %200, %cst_37 {dimension_numbers = #tpu.dot_dimension_numbers<[2], [2], [1], [1], [0, 0, 0, 1, 1, 1], [0], [0]>} : vector<8x8x8xf32>, vector<8x8x8xf32>, vector<8x8x8xf32> -> vector<8x8x8xf32>
    "tpu.trace_stop"() : () -> ()
    %cst_38 = arith.constant dense<0xFF800000> : vector<8x8xf32>
    %203 = vector.multi_reduction <maximumf>, %202, %cst_38 [2] : vector<8x8x8xf32> to vector<8x8xf32>
    %204 = vector.shape_cast %203 : vector<8x8xf32> to vector<8x8x1xf32>
    %205 = vector.broadcast %204 : vector<8x8x1xf32> to vector<8x8x8xf32>
    %206 = arith.subf %202, %205 : vector<8x8x8xf32>
    %207 = math.exp %206 : vector<8x8x8xf32>
    %cst_39 = arith.constant dense<0.000000e+00> : vector<8x8xf32>
    %208 = vector.multi_reduction <add>, %207, %cst_39 [2] : vector<8x8x8xf32> to vector<8x8xf32>
    %209 = vector.shape_cast %208 : vector<8x8xf32> to vector<8x8x1xf32>
    %210 = tpu.reciprocal %209 {approx = true} : vector<8x8x1xf32> -> vector<8x8x1xf32>
    %211 = vector.broadcast %210 : vector<8x8x1xf32> to vector<8x8x8xf32>
    %212 = arith.mulf %207, %211 : vector<8x8x8xf32>
    "tpu.trace_start"() <{level = 10 : i32, message = "gqk,gke->gqe"}> : () -> ()
    %cst_40 = arith.constant dense<0.000000e+00> : vector<8x8x8xf32>
    %213 = tpu.matmul %212, %201, %cst_40 {dimension_numbers = #tpu.dot_dimension_numbers<[2], [1], [1], [2], [0, 0, 0, 1, 1, 2], [0], [0]>} : vector<8x8x8xf32>, vector<8x8x8xf32>, vector<8x8x8xf32> -> vector<8x8x8xf32>
    "tpu.trace_stop"() : () -> ()
    %214 = vector.shape_cast %213 : vector<8x8x8xf32> to vector<4x16x8xf32>
    %215 = vector.extract_strided_slice %214 {offsets = [0, 0, 0], sizes = [1, 16, 8], strides = [1, 1, 1]} : vector<4x16x8xf32> to vector<1x16x8xf32>
    %216 = vector.shape_cast %215 : vector<1x16x8xf32> to vector<16x8xf32>
    %217 = vector.extract_strided_slice %214 {offsets = [1, 0, 0], sizes = [1, 16, 8], strides = [1, 1, 1]} : vector<4x16x8xf32> to vector<1x16x8xf32>
    %218 = vector.shape_cast %217 : vector<1x16x8xf32> to vector<16x8xf32>
    %219 = vector.extract_strided_slice %214 {offsets = [2, 0, 0], sizes = [1, 16, 8], strides = [1, 1, 1]} : vector<4x16x8xf32> to vector<1x16x8xf32>
    %220 = vector.shape_cast %219 : vector<1x16x8xf32> to vector<16x8xf32>
    %221 = vector.extract_strided_slice %214 {offsets = [3, 0, 0], sizes = [1, 16, 8], strides = [1, 1, 1]} : vector<4x16x8xf32> to vector<1x16x8xf32>
    %222 = vector.shape_cast %221 : vector<1x16x8xf32> to vector<16x8xf32>
    %223 = tpu.concatenate %216, %218, %220, %222 in 1 : vector<16x8xf32>, vector<16x8xf32>, vector<16x8xf32>, vector<16x8xf32> -> vector<16x32xf32>
    %cst_41 = arith.constant dense<0.000000e+00> : vector<16x32xf32>
    %224 = tpu.matmul %223, %144, %cst_41 {dimension_numbers = #tpu.dot_dimension_numbers<[1], [0], [0], [1], [0, 0, 1, 1], [], []>} : vector<16x32xf32>, vector<32x32xf32>, vector<16x32xf32> -> vector<16x32xf32>
    %225 = arith.addf %130, %224 : vector<16x32xf32>
    %226 = vector.broadcast %138 : vector<1x32xf32> to vector<16x32xf32>
    %227 = arith.addf %225, %226 : vector<16x32xf32>
    %cst_42 = arith.constant dense<0.000000e+00> : vector<16xf32>
    %228 = vector.multi_reduction <add>, %227, %cst_42 [1] : vector<16x32xf32> to vector<16xf32>
    %229 = vector.shape_cast %228 : vector<16xf32> to vector<16x1xf32>
    %230 = arith.mulf %227, %227 : vector<16x32xf32>
    %cst_43 = arith.constant dense<0.000000e+00> : vector<16xf32>
    %231 = vector.multi_reduction <add>, %230, %cst_43 [1] : vector<16x32xf32> to vector<16xf32>
    %232 = vector.shape_cast %231 : vector<16xf32> to vector<16x1xf32>
    %cst_44 = arith.constant 3.125000e-02 : f32
    %233 = vector.broadcast %cst_44 : f32 to vector<16x1xf32>
    %234 = arith.mulf %229, %233 : vector<16x1xf32>
    %cst_45 = arith.constant 3.125000e-02 : f32
    %235 = vector.broadcast %cst_45 : f32 to vector<16x1xf32>
    %236 = arith.mulf %232, %235 : vector<16x1xf32>
    %237 = arith.mulf %234, %234 : vector<16x1xf32>
    %238 = arith.subf %236, %237 : vector<16x1xf32>
    %239 = vector.broadcast %234 : vector<16x1xf32> to vector<16x32xf32>
    %240 = arith.subf %227, %239 : vector<16x32xf32>
    %cst_46 = arith.constant 9.99999974E-6 : f32
    %241 = vector.broadcast %cst_46 : f32 to vector<16x1xf32>
    %242 = arith.addf %238, %241 : vector<16x1xf32>
    %243 = math.rsqrt %242 : vector<16x1xf32>
    %244 = vector.broadcast %243 : vector<16x1xf32> to vector<16x32xf32>
    %245 = arith.mulf %240, %244 : vector<16x32xf32>
    %246 = vector.broadcast %139 : vector<1x32xf32> to vector<16x32xf32>
    %247 = arith.mulf %245, %246 : vector<16x32xf32>
    %248 = vector.broadcast %140 : vector<1x32xf32> to vector<16x32xf32>
    %249 = arith.addf %247, %248 : vector<16x32xf32>
    %cst_47 = arith.constant dense<0.000000e+00> : vector<16x32xf32>
    %250 = tpu.matmul %249, %145, %cst_47 {dimension_numbers = #tpu.dot_dimension_numbers<[1], [0], [0], [1], [0, 0, 1, 1], [], []>} : vector<16x32xf32>, vector<32x32xf32>, vector<16x32xf32> -> vector<16x32xf32>
    %251 = vector.broadcast %141 : vector<1x32xf32> to vector<16x32xf32>
    %252 = arith.addf %250, %251 : vector<16x32xf32>
    %cst_48 = arith.constant 1.000000e-01 : f32
    %253 = vector.broadcast %cst_48 : f32 to vector<16x32xf32>
    %254 = arith.mulf %253, %252 : vector<16x32xf32>
    %255 = arith.maximumf %252, %254 : vector<16x32xf32>
    %cst_49 = arith.constant dense<0.000000e+00> : vector<16x32xf32>
    %256 = tpu.matmul %255, %146, %cst_49 {dimension_numbers = #tpu.dot_dimension_numbers<[1], [0], [0], [1], [0, 0, 1, 1], [], []>} : vector<16x32xf32>, vector<32x32xf32>, vector<16x32xf32> -> vector<16x32xf32>
    %257 = vector.broadcast %142 : vector<1x32xf32> to vector<16x32xf32>
    %258 = arith.addf %256, %257 : vector<16x32xf32>
    %259 = arith.addf %227, %258 : vector<16x32xf32>
    %c2 = arith.constant 2 : index
    %c0_50 = arith.constant 0 : index
    %c0_51 = arith.constant 0 : index
    %260 = vector.load %arg1[%c2, %c0_50, %c0_51] : memref<3x128x96xf32, #tpu.memory_space<vmem>>, vector<1x128x96xf32>
    %261 = vector.shape_cast %260 : vector<1x128x96xf32> to vector<128x96xf32>
    %c2_52 = arith.constant 2 : index
    %c0_53 = arith.constant 0 : index
    %c0_54 = arith.constant 0 : index
    %262 = vector.load %arg2[%c2_52, %c0_53, %c0_54] : memref<4x8x128xf32, #tpu.memory_space<vmem>>, vector<1x8x128xf32>
    %263 = vector.shape_cast %262 : vector<1x8x128xf32> to vector<8x128xf32>
    %264 = vector.extract_strided_slice %263 {offsets = [0, 0], sizes = [1, 32], strides = [1, 1]} : vector<8x128xf32> to vector<1x32xf32>
    %265 = vector.extract_strided_slice %263 {offsets = [1, 0], sizes = [1, 32], strides = [1, 1]} : vector<8x128xf32> to vector<1x32xf32>
    %266 = vector.extract_strided_slice %263 {offsets = [2, 0], sizes = [1, 96], strides = [1, 1]} : vector<8x128xf32> to vector<1x96xf32>
    %267 = vector.extract_strided_slice %263 {offsets = [3, 0], sizes = [1, 32], strides = [1, 1]} : vector<8x128xf32> to vector<1x32xf32>
    %268 = vector.extract_strided_slice %263 {offsets = [4, 0], sizes = [1, 32], strides = [1, 1]} : vector<8x128xf32> to vector<1x32xf32>
    %269 = vector.extract_strided_slice %263 {offsets = [5, 0], sizes = [1, 32], strides = [1, 1]} : vector<8x128xf32> to vector<1x32xf32>
    %270 = vector.extract_strided_slice %263 {offsets = [6, 0], sizes = [1, 32], strides = [1, 1]} : vector<8x128xf32> to vector<1x32xf32>
    %271 = vector.extract_strided_slice %263 {offsets = [7, 0], sizes = [1, 32], strides = [1, 1]} : vector<8x128xf32> to vector<1x32xf32>
    %272 = vector.extract_strided_slice %261 {offsets = [0, 0], sizes = [32, 96], strides = [1, 1]} : vector<128x96xf32> to vector<32x96xf32>
    %273 = vector.extract_strided_slice %261 {offsets = [32, 0], sizes = [32, 32], strides = [1, 1]} : vector<128x96xf32> to vector<32x32xf32>
    %274 = vector.extract_strided_slice %261 {offsets = [64, 0], sizes = [32, 32], strides = [1, 1]} : vector<128x96xf32> to vector<32x32xf32>
    %275 = vector.extract_strided_slice %261 {offsets = [96, 0], sizes = [32, 32], strides = [1, 1]} : vector<128x96xf32> to vector<32x32xf32>
    %cst_55 = arith.constant dense<0.000000e+00> : vector<16xf32>
    %276 = vector.multi_reduction <add>, %259, %cst_55 [1] : vector<16x32xf32> to vector<16xf32>
    %277 = vector.shape_cast %276 : vector<16xf32> to vector<16x1xf32>
    %278 = arith.mulf %259, %259 : vector<16x32xf32>
    %cst_56 = arith.constant dense<0.000000e+00> : vector<16xf32>
    %279 = vector.multi_reduction <add>, %278, %cst_56 [1] : vector<16x32xf32> to vector<16xf32>
    %280 = vector.shape_cast %279 : vector<16xf32> to vector<16x1xf32>
    %cst_57 = arith.constant 3.125000e-02 : f32
    %281 = vector.broadcast %cst_57 : f32 to vector<16x1xf32>
    %282 = arith.mulf %277, %281 : vector<16x1xf32>
    %cst_58 = arith.constant 3.125000e-02 : f32
    %283 = vector.broadcast %cst_58 : f32 to vector<16x1xf32>
    %284 = arith.mulf %280, %283 : vector<16x1xf32>
    %285 = arith.mulf %282, %282 : vector<16x1xf32>
    %286 = arith.subf %284, %285 : vector<16x1xf32>
    %287 = vector.broadcast %282 : vector<16x1xf32> to vector<16x32xf32>
    %288 = arith.subf %259, %287 : vector<16x32xf32>
    %cst_59 = arith.constant 9.99999974E-6 : f32
    %289 = vector.broadcast %cst_59 : f32 to vector<16x1xf32>
    %290 = arith.addf %286, %289 : vector<16x1xf32>
    %291 = math.rsqrt %290 : vector<16x1xf32>
    %292 = vector.broadcast %291 : vector<16x1xf32> to vector<16x32xf32>
    %293 = arith.mulf %288, %292 : vector<16x32xf32>
    %294 = vector.broadcast %264 : vector<1x32xf32> to vector<16x32xf32>
    %295 = arith.mulf %293, %294 : vector<16x32xf32>
    %296 = vector.broadcast %265 : vector<1x32xf32> to vector<16x32xf32>
    %297 = arith.addf %295, %296 : vector<16x32xf32>
    %cst_60 = arith.constant dense<0.000000e+00> : vector<16x96xf32>
    %298 = tpu.matmul %297, %272, %cst_60 {dimension_numbers = #tpu.dot_dimension_numbers<[1], [0], [0], [1], [0, 0, 1, 1], [], []>} : vector<16x32xf32>, vector<32x96xf32>, vector<16x96xf32> -> vector<16x96xf32>
    %299 = vector.broadcast %266 : vector<1x96xf32> to vector<16x96xf32>
    %300 = arith.addf %298, %299 : vector<16x96xf32>
    %301 = vector.extract_strided_slice %300 {offsets = [0, 0], sizes = [16, 8], strides = [1, 1]} : vector<16x96xf32> to vector<16x8xf32>
    %302 = vector.extract_strided_slice %300 {offsets = [0, 8], sizes = [16, 8], strides = [1, 1]} : vector<16x96xf32> to vector<16x8xf32>
    %303 = vector.extract_strided_slice %300 {offsets = [0, 16], sizes = [16, 8], strides = [1, 1]} : vector<16x96xf32> to vector<16x8xf32>
    %304 = vector.extract_strided_slice %300 {offsets = [0, 24], sizes = [16, 8], strides = [1, 1]} : vector<16x96xf32> to vector<16x8xf32>
    %305 = vector.shape_cast %301 : vector<16x8xf32> to vector<1x16x8xf32>
    %306 = vector.shape_cast %302 : vector<16x8xf32> to vector<1x16x8xf32>
    %307 = vector.shape_cast %303 : vector<16x8xf32> to vector<1x16x8xf32>
    %308 = vector.shape_cast %304 : vector<16x8xf32> to vector<1x16x8xf32>
    %309 = tpu.concatenate %305, %306, %307, %308 in 0 : vector<1x16x8xf32>, vector<1x16x8xf32>, vector<1x16x8xf32>, vector<1x16x8xf32> -> vector<4x16x8xf32>
    %310 = vector.extract_strided_slice %300 {offsets = [0, 32], sizes = [16, 8], strides = [1, 1]} : vector<16x96xf32> to vector<16x8xf32>
    %311 = vector.extract_strided_slice %300 {offsets = [0, 40], sizes = [16, 8], strides = [1, 1]} : vector<16x96xf32> to vector<16x8xf32>
    %312 = vector.extract_strided_slice %300 {offsets = [0, 48], sizes = [16, 8], strides = [1, 1]} : vector<16x96xf32> to vector<16x8xf32>
    %313 = vector.extract_strided_slice %300 {offsets = [0, 56], sizes = [16, 8], strides = [1, 1]} : vector<16x96xf32> to vector<16x8xf32>
    %314 = vector.shape_cast %310 : vector<16x8xf32> to vector<1x16x8xf32>
    %315 = vector.shape_cast %311 : vector<16x8xf32> to vector<1x16x8xf32>
    %316 = vector.shape_cast %312 : vector<16x8xf32> to vector<1x16x8xf32>
    %317 = vector.shape_cast %313 : vector<16x8xf32> to vector<1x16x8xf32>
    %318 = tpu.concatenate %314, %315, %316, %317 in 0 : vector<1x16x8xf32>, vector<1x16x8xf32>, vector<1x16x8xf32>, vector<1x16x8xf32> -> vector<4x16x8xf32>
    %319 = vector.extract_strided_slice %300 {offsets = [0, 64], sizes = [16, 8], strides = [1, 1]} : vector<16x96xf32> to vector<16x8xf32>
    %320 = vector.extract_strided_slice %300 {offsets = [0, 72], sizes = [16, 8], strides = [1, 1]} : vector<16x96xf32> to vector<16x8xf32>
    %321 = vector.extract_strided_slice %300 {offsets = [0, 80], sizes = [16, 8], strides = [1, 1]} : vector<16x96xf32> to vector<16x8xf32>
    %322 = vector.extract_strided_slice %300 {offsets = [0, 88], sizes = [16, 8], strides = [1, 1]} : vector<16x96xf32> to vector<16x8xf32>
    %323 = vector.shape_cast %319 : vector<16x8xf32> to vector<1x16x8xf32>
    %324 = vector.shape_cast %320 : vector<16x8xf32> to vector<1x16x8xf32>
    %325 = vector.shape_cast %321 : vector<16x8xf32> to vector<1x16x8xf32>
    %326 = vector.shape_cast %322 : vector<16x8xf32> to vector<1x16x8xf32>
    %327 = tpu.concatenate %323, %324, %325, %326 in 0 : vector<1x16x8xf32>, vector<1x16x8xf32>, vector<1x16x8xf32>, vector<1x16x8xf32> -> vector<4x16x8xf32>
    %328 = vector.shape_cast %309 : vector<4x16x8xf32> to vector<8x8x8xf32>
    %329 = vector.shape_cast %318 : vector<4x16x8xf32> to vector<8x8x8xf32>
    %330 = vector.shape_cast %327 : vector<4x16x8xf32> to vector<8x8x8xf32>
    "tpu.trace_start"() <{level = 10 : i32, message = "gqe,gke->gqk"}> : () -> ()
    %cst_61 = arith.constant dense<0.000000e+00> : vector<8x8x8xf32>
    %331 = tpu.matmul %328, %329, %cst_61 {dimension_numbers = #tpu.dot_dimension_numbers<[2], [2], [1], [1], [0, 0, 0, 1, 1, 1], [0], [0]>} : vector<8x8x8xf32>, vector<8x8x8xf32>, vector<8x8x8xf32> -> vector<8x8x8xf32>
    "tpu.trace_stop"() : () -> ()
    %cst_62 = arith.constant dense<0xFF800000> : vector<8x8xf32>
    %332 = vector.multi_reduction <maximumf>, %331, %cst_62 [2] : vector<8x8x8xf32> to vector<8x8xf32>
    %333 = vector.shape_cast %332 : vector<8x8xf32> to vector<8x8x1xf32>
    %334 = vector.broadcast %333 : vector<8x8x1xf32> to vector<8x8x8xf32>
    %335 = arith.subf %331, %334 : vector<8x8x8xf32>
    %336 = math.exp %335 : vector<8x8x8xf32>
    %cst_63 = arith.constant dense<0.000000e+00> : vector<8x8xf32>
    %337 = vector.multi_reduction <add>, %336, %cst_63 [2] : vector<8x8x8xf32> to vector<8x8xf32>
    %338 = vector.shape_cast %337 : vector<8x8xf32> to vector<8x8x1xf32>
    %339 = tpu.reciprocal %338 {approx = true} : vector<8x8x1xf32> -> vector<8x8x1xf32>
    %340 = vector.broadcast %339 : vector<8x8x1xf32> to vector<8x8x8xf32>
    %341 = arith.mulf %336, %340 : vector<8x8x8xf32>
    "tpu.trace_start"() <{level = 10 : i32, message = "gqk,gke->gqe"}> : () -> ()
    %cst_64 = arith.constant dense<0.000000e+00> : vector<8x8x8xf32>
    %342 = tpu.matmul %341, %330, %cst_64 {dimension_numbers = #tpu.dot_dimension_numbers<[2], [1], [1], [2], [0, 0, 0, 1, 1, 2], [0], [0]>} : vector<8x8x8xf32>, vector<8x8x8xf32>, vector<8x8x8xf32> -> vector<8x8x8xf32>
    "tpu.trace_stop"() : () -> ()
    %343 = vector.shape_cast %342 : vector<8x8x8xf32> to vector<4x16x8xf32>
    %344 = vector.extract_strided_slice %343 {offsets = [0, 0, 0], sizes = [1, 16, 8], strides = [1, 1, 1]} : vector<4x16x8xf32> to vector<1x16x8xf32>
    %345 = vector.shape_cast %344 : vector<1x16x8xf32> to vector<16x8xf32>
    %346 = vector.extract_strided_slice %343 {offsets = [1, 0, 0], sizes = [1, 16, 8], strides = [1, 1, 1]} : vector<4x16x8xf32> to vector<1x16x8xf32>
    %347 = vector.shape_cast %346 : vector<1x16x8xf32> to vector<16x8xf32>
    %348 = vector.extract_strided_slice %343 {offsets = [2, 0, 0], sizes = [1, 16, 8], strides = [1, 1, 1]} : vector<4x16x8xf32> to vector<1x16x8xf32>
    %349 = vector.shape_cast %348 : vector<1x16x8xf32> to vector<16x8xf32>
    %350 = vector.extract_strided_slice %343 {offsets = [3, 0, 0], sizes = [1, 16, 8], strides = [1, 1, 1]} : vector<4x16x8xf32> to vector<1x16x8xf32>
    %351 = vector.shape_cast %350 : vector<1x16x8xf32> to vector<16x8xf32>
    %352 = tpu.concatenate %345, %347, %349, %351 in 1 : vector<16x8xf32>, vector<16x8xf32>, vector<16x8xf32>, vector<16x8xf32> -> vector<16x32xf32>
    %cst_65 = arith.constant dense<0.000000e+00> : vector<16x32xf32>
    %353 = tpu.matmul %352, %273, %cst_65 {dimension_numbers = #tpu.dot_dimension_numbers<[1], [0], [0], [1], [0, 0, 1, 1], [], []>} : vector<16x32xf32>, vector<32x32xf32>, vector<16x32xf32> -> vector<16x32xf32>
    %354 = arith.addf %259, %353 : vector<16x32xf32>
    %355 = vector.broadcast %267 : vector<1x32xf32> to vector<16x32xf32>
    %356 = arith.addf %354, %355 : vector<16x32xf32>
    %cst_66 = arith.constant dense<0.000000e+00> : vector<16xf32>
    %357 = vector.multi_reduction <add>, %356, %cst_66 [1] : vector<16x32xf32> to vector<16xf32>
    %358 = vector.shape_cast %357 : vector<16xf32> to vector<16x1xf32>
    %359 = arith.mulf %356, %356 : vector<16x32xf32>
    %cst_67 = arith.constant dense<0.000000e+00> : vector<16xf32>
    %360 = vector.multi_reduction <add>, %359, %cst_67 [1] : vector<16x32xf32> to vector<16xf32>
    %361 = vector.shape_cast %360 : vector<16xf32> to vector<16x1xf32>
    %cst_68 = arith.constant 3.125000e-02 : f32
    %362 = vector.broadcast %cst_68 : f32 to vector<16x1xf32>
    %363 = arith.mulf %358, %362 : vector<16x1xf32>
    %cst_69 = arith.constant 3.125000e-02 : f32
    %364 = vector.broadcast %cst_69 : f32 to vector<16x1xf32>
    %365 = arith.mulf %361, %364 : vector<16x1xf32>
    %366 = arith.mulf %363, %363 : vector<16x1xf32>
    %367 = arith.subf %365, %366 : vector<16x1xf32>
    %368 = vector.broadcast %363 : vector<16x1xf32> to vector<16x32xf32>
    %369 = arith.subf %356, %368 : vector<16x32xf32>
    %cst_70 = arith.constant 9.99999974E-6 : f32
    %370 = vector.broadcast %cst_70 : f32 to vector<16x1xf32>
    %371 = arith.addf %367, %370 : vector<16x1xf32>
    %372 = math.rsqrt %371 : vector<16x1xf32>
    %373 = vector.broadcast %372 : vector<16x1xf32> to vector<16x32xf32>
    %374 = arith.mulf %369, %373 : vector<16x32xf32>
    %375 = vector.broadcast %268 : vector<1x32xf32> to vector<16x32xf32>
    %376 = arith.mulf %374, %375 : vector<16x32xf32>
    %377 = vector.broadcast %269 : vector<1x32xf32> to vector<16x32xf32>
    %378 = arith.addf %376, %377 : vector<16x32xf32>
    %cst_71 = arith.constant dense<0.000000e+00> : vector<16x32xf32>
    %379 = tpu.matmul %378, %274, %cst_71 {dimension_numbers = #tpu.dot_dimension_numbers<[1], [0], [0], [1], [0, 0, 1, 1], [], []>} : vector<16x32xf32>, vector<32x32xf32>, vector<16x32xf32> -> vector<16x32xf32>
    %380 = vector.broadcast %270 : vector<1x32xf32> to vector<16x32xf32>
    %381 = arith.addf %379, %380 : vector<16x32xf32>
    %cst_72 = arith.constant 1.000000e-01 : f32
    %382 = vector.broadcast %cst_72 : f32 to vector<16x32xf32>
    %383 = arith.mulf %382, %381 : vector<16x32xf32>
    %384 = arith.maximumf %381, %383 : vector<16x32xf32>
    %cst_73 = arith.constant dense<0.000000e+00> : vector<16x32xf32>
    %385 = tpu.matmul %384, %275, %cst_73 {dimension_numbers = #tpu.dot_dimension_numbers<[1], [0], [0], [1], [0, 0, 1, 1], [], []>} : vector<16x32xf32>, vector<32x32xf32>, vector<16x32xf32> -> vector<16x32xf32>
    %386 = vector.broadcast %271 : vector<1x32xf32> to vector<16x32xf32>
    %387 = arith.addf %385, %386 : vector<16x32xf32>
    %388 = arith.addf %356, %387 : vector<16x32xf32>
    %c3 = arith.constant 3 : index
    %c0_74 = arith.constant 0 : index
    %c0_75 = arith.constant 0 : index
    %389 = vector.load %arg2[%c3, %c0_74, %c0_75] : memref<4x8x128xf32, #tpu.memory_space<vmem>>, vector<1x8x128xf32>
    %390 = vector.shape_cast %389 : vector<1x8x128xf32> to vector<8x128xf32>
    %391 = vector.extract_strided_slice %390 {offsets = [0, 0], sizes = [1, 32], strides = [1, 1]} : vector<8x128xf32> to vector<1x32xf32>
    %392 = vector.extract_strided_slice %390 {offsets = [1, 0], sizes = [1, 32], strides = [1, 1]} : vector<8x128xf32> to vector<1x32xf32>
    %cst_76 = arith.constant dense<0.000000e+00> : vector<16xf32>
    %393 = vector.multi_reduction <add>, %388, %cst_76 [1] : vector<16x32xf32> to vector<16xf32>
    %394 = vector.shape_cast %393 : vector<16xf32> to vector<16x1xf32>
    %395 = arith.mulf %388, %388 : vector<16x32xf32>
    %cst_77 = arith.constant dense<0.000000e+00> : vector<16xf32>
    %396 = vector.multi_reduction <add>, %395, %cst_77 [1] : vector<16x32xf32> to vector<16xf32>
    %397 = vector.shape_cast %396 : vector<16xf32> to vector<16x1xf32>
    %cst_78 = arith.constant 3.125000e-02 : f32
    %398 = vector.broadcast %cst_78 : f32 to vector<16x1xf32>
    %399 = arith.mulf %394, %398 : vector<16x1xf32>
    %cst_79 = arith.constant 3.125000e-02 : f32
    %400 = vector.broadcast %cst_79 : f32 to vector<16x1xf32>
    %401 = arith.mulf %397, %400 : vector<16x1xf32>
    %402 = arith.mulf %399, %399 : vector<16x1xf32>
    %403 = arith.subf %401, %402 : vector<16x1xf32>
    %404 = vector.broadcast %399 : vector<16x1xf32> to vector<16x32xf32>
    %405 = arith.subf %388, %404 : vector<16x32xf32>
    %cst_80 = arith.constant 9.99999974E-6 : f32
    %406 = vector.broadcast %cst_80 : f32 to vector<16x1xf32>
    %407 = arith.addf %403, %406 : vector<16x1xf32>
    %408 = math.rsqrt %407 : vector<16x1xf32>
    %409 = vector.broadcast %408 : vector<16x1xf32> to vector<16x32xf32>
    %410 = arith.mulf %405, %409 : vector<16x32xf32>
    %411 = vector.broadcast %391 : vector<1x32xf32> to vector<16x32xf32>
    %412 = arith.mulf %410, %411 : vector<16x32xf32>
    %413 = vector.broadcast %392 : vector<1x32xf32> to vector<16x32xf32>
    %414 = arith.addf %412, %413 : vector<16x32xf32>
    %415 = vector.shape_cast %414 : vector<16x32xf32> to vector<2x8x32xf32>
    %c0_81 = arith.constant 0 : index
    %c0_82 = arith.constant 0 : index
    %c0_83 = arith.constant 0 : index
    %416 = vector.load %arg3[%c0_81, %c0_82, %c0_83] : memref<2x8x32xf32, #tpu.memory_space<vmem>>, vector<2x8x32xf32>
    tpu.vector_store %arg3[%c0_81, %c0_82, %c0_83], %415 {strides = array<i32>} : memref<2x8x32xf32, #tpu.memory_space<vmem>>, vector<2x8x32xf32>,
    return
  }
}

</mosaic_0001>

<bundles_post_ra>
// kernel: tpu_custom_call.1
= control target key start
LH: loop header
LB: loop body
LE: loop exit
PB: predicated region body
PF: predicated region fallthrough
CT: control target
= control target key end

     0   :  { %vm34_vm0 = vcmask 261120   ;;  %s7390_s0 = inlined_call_operand.vmem [shape: f32[2,8,32], index: 0, kind: input, shape index: {}]   ;;  %s7391_s1 = inlined_call_operand.vmem [shape: f32[3,128,96], index: 1, kind: input, shape index: {}]   ;;  %s7392_s2 = inlined_call_operand.vmem [shape: f32[4,8,128], index: 2, kind: input, shape index: {}]   ;;  %s7393_s3 = inlined_call_operand.hbm [shape: f32[2,8,32], index: 3, kind: output, shape index: {}]  }
   0x1   :  { %v6446_v0 = vld [vmem:[%s7390_s0] sm:$0xff]  ;;  %v6451_v1 = vld [vmem:[%s7390_s0 + $0x8] sm:$0xff] }
   0x2   :  { %8 = vsyncpa [#allocation3], 0  ;;  %v35_v2 = vsel %vm34_vm0, %v6446_v0, 0.0  ;;  %v41_v3 = vmul.f32 %v6446_v0, %v6446_v0  ;;  %v42_v4 = vmul.f32 %v6451_v1, %v6451_v1  ;;  %v38_v6 = vsel %vm34_vm0, %v6451_v1, 0.0  ;;  %v17_v8 = vld [vmem:[%s7391_s1] sm:$0xff]  ;;  %v18_v9 = vld [vmem:[%s7391_s1 + $0x8] sm:$0xff] }
   0x3   :  { %36 = vadd.xlane.f32.xlu0 %v35_v2  ;;  %v19_v10 = vld [vmem:[%s7391_s1 + $0x10] sm:$0xff]  ;;  %v6155_v11 = vpack.c.bf16 %v18_v9, %v17_v8  ;;  %v20_v12 = vld [vmem:[%s7391_s1 + $0x18] sm:$0xff]  ;;  %v65_v23 = vlaneseq  ;;  %v6483_v31 = vld [vmem:[%s7392_s2] sm:$0xff]  ;;  %v6411_v47 = vmov 0.0   ;;  %vm6412_vm1 = vmmov 0   ;;  %s6413_s25 = smov 120  }
   0x4   :  { %v43_v5 = vsel %vm34_vm0, %v41_v3, 0.0  ;;  %v46_v7 = vsel %vm34_vm0, %v42_v4, 0.0  ;;  %v6159_v13 = vpack.c.bf16 %v20_v12, %v19_v10  ;;  %5794 = vmatprep.subr.mxu1 %v6411_v47  ;;  %5796 = vmatprep.mubr.msk.f32.mxu1 %vm6412_vm1, %v6411_v47  ;;  %s6414_s26 = smov 112   ;;  %s6415_s27 = smov 104   ;;  %vm178_vm2 = vcmask 64512  }
   0x5   :  { %44 = vadd.xlane.f32.xlu1 %v43_v5  ;;  %6156 = vmatprep.subr.bf16.mxu0 %v6155_v11  ;;  %v6475_v28 = vshrl.u32 %v65_v23, 7  ;;  %s6416_s28 = smov 96   ;;  %s6417_s29 = smov 64   ;;  %vm1507_vm3 = vcmask 130048   ;;  %vm1510_vm4 = vcmask 195584  }
   0x6   :  { %6158 = vmatpush3.bf16.msra.mxu0 %v6155_v11  ;;  %s6418_s11 = smov 8   ;;  %s6419_s12 = smov 16  }
   0x7   :  { %39 = vadd.xlane.f32.xlu0 %v38_v6  ;;  %6160 = vmatprep.subr.bf16.mxu0 %v6159_v13  ;;  %v6478_v30 = vsub.s32 0, %v6475_v28  ;;  %v6486_v32 = vsub.s32 1, %v6475_v28  ;;  %v6497_v45 = vsub.s32 2, %v6475_v28  ;;  %s6420_s13 = smov 24   ;;  %s6421_s9 = smov [#allocation2]  }
   0x8   :  { %s5473_s10 = sshll.u32 %s6421_s9, 4  ;;  %s5474_s10 = int_to_ptr.vmem [resolvable:$true] %s5473_s10 }
   0x9   :  { %47 = vadd.xlane.f32.xlu1 %v46_v7  ;;  %v68_v34 = vrot.slane %v6483_v31, %v6478_v30  ;;  %v74_v37 = vrot.slane %v6483_v31, %v6486_v32  ;;  %v80_v46 = vrot.slane %v6483_v31, %v6497_v45  ;;  %p6392_p1 = scmp.lt.s32.totalorder %s5474_s10, %s5474_s10 }
   0xa   :  { %6162 = vmatpush3.bf16.msra.mxu0 %v6159_v13 }
   0xb   :  { %5814 = vmatprep.subr.mxu0 %v6411_v47 }
  0x90   :  { %v37_v14 = vpop.xlane.xlu0 %36 }
  0x91   :  { %v49_v15 = vmul.f32 0.03125, %v37_v14 }
  0x92   :  { %v45_v16 = vpop.xlane.xlu1 %44 }
  0x93   :  { %v53_v17 = vmul.f32 %v49_v15, %v49_v15  ;;  %v51_v18 = vmul.f32 0.03125, %v45_v16  ;;  %v57_v33 = vsub.f32 %v6446_v0, %v49_v15 }
  0x94   :  { %v40_v19 = vpop.xlane.xlu0 %39 }
  0x95   :  { %v55_v20 = vsub.f32 %v51_v18, %v53_v17  ;;  %v50_v21 = vmul.f32 0.03125, %v40_v19 }
  0x96   :  { %v48_v22 = vpop.xlane.xlu1 %47 }
  0x97   :  { %v59_v24 = vadd.f32 1e-05, %v55_v20  ;;  %v54_v25 = vmul.f32 %v50_v21, %v50_v21  ;;  %v52_v26 = vmul.f32 0.03125, %v48_v22  ;;  %v58_v38 = vsub.f32 %v6451_v1, %v50_v21 }
  0x99   :  { %6263 = vrsqrt.f32 %v59_v24  ;;  %v56_v27 = vsub.f32 %v52_v26, %v54_v25 }
  0x9b   :  { %v60_v29 = vadd.f32 1e-05, %v56_v27 }
  0x9d   :  { %6265 = vrsqrt.f32 %v60_v29 }
  0xa3   :  { %v6264_v35 = vpop.eup %6263 }
  0xa4   :  { %v63_v36 = vmul.f32 %v6264_v35, %v57_v33 }
  0xa6   :  { %v69_v39 = vmul.f32 %v68_v34, %v63_v36 }
  0xa7   :  { %v6266_v40 = vpop.eup %6265 }
  0xa8   :  { %v64_v41 = vmul.f32 %v6266_v40, %v58_v38  ;;  %v75_v42 = vadd.f32 %v74_v37, %v69_v39 }
  0xaa   :  { %v70_v43 = vmul.f32 %v68_v34, %v64_v41  ;;  %5791 = vmatprep.mubr.msk.f32.mxu0 %vm34_vm0, %v75_v42 }
  0xac   :  { %v76_v44 = vadd.f32 %v74_v37, %v70_v43 }
  0xae   :  { %5792 = vmatmul.mubr.msk.f32.vlgmr.msra.gmra.mrb[0].mxu0 %vm34_vm0, %v76_v44 }
  0xaf   :  { %5816 = vmatprep.mubr.msk.f32.mxu0 %vm6412_vm1, %v6411_v47 }
 0x181   :  { %v5793_v48 = vpop.f32.mrb[0].mxu0 }
 0x182   :  { %v6507_v49 = vadd.f32 %v5793_v48, %v80_v46  ;;  %v153_v50 = vpop.f32.mrb[1].mxu0 }
 0x183   :  { %v6509_v51 = vadd.f32 %v153_v50, %v80_v46 }
 0x184   :  { %166 = vrot.lane.b32.xlu1 %v6507_v49, %s6413_s25 }
 0x185   :  { %164 = vrot.lane.b32.xlu0 %v6509_v51, %s6413_s25 }
 0x188   :  { %168 = vrot.lane.b32.xlu1 %v6509_v51, %s6414_s26 }
 0x189   :  { %172 = vrot.lane.b32.xlu0 %v6509_v51, %s6415_s27 }
 0x18c   :  { %170 = vrot.lane.b32.xlu1 %v6507_v49, %s6414_s26 }
 0x18d   :  { %176 = vrot.lane.b32.xlu0 %v6509_v51, %s6416_s28 }
 0x190   :  { %174 = vrot.lane.b32.xlu1 %v6507_v49, %s6415_s27 }
 0x194   :  { %253 = vrot.lane.b32.xlu1 %v6507_v49, %s6416_s28 }
 0x1f6   :  { %v6527_v52 = vpop.permute.xlu1 %166 }
 0x1f7   :  { %405 = vrot.lane.b32.xlu1 %v6527_v52, %s6416_s28  ;;  %v6531_v53 = vpop.permute.xlu0 %164 }
 0x1f8   :  { %329 = vrot.lane.b32.xlu0 %v6531_v53, %s6416_s28 }
 0x1fa   :  { %v6535_v54 = vpop.permute.xlu1 %168 }
 0x1fb   :  { %v6537_v55 = vpop.permute.xlu0 %172 }
 0x1fc   :  { %481 = vrot.lane.b32.xlu0 %v6535_v54, %s6416_s28 }
 0x1fe   :  { %v6541_v56 = vpop.permute.xlu1 %170 }
 0x1ff   :  { %557 = vrot.lane.b32.xlu1 %v6541_v56, %s6416_s28  ;;  %v177_v57 = vpop.permute.xlu0 %176 }
 0x200   :  { %633 = vrot.lane.b32.xlu0 %v6537_v55, %s6416_s28  ;;  %5795 = vmatpush3.xpose.msk.msra.mxu1 %vm178_vm2, %v177_v57 }
 0x201   :  { %5799 = vmatprep.subr.mxu1 %v6411_v47 }
 0x202   :  { %v6549_v58 = vpop.permute.xlu1 %174 }
 0x203   :  { %709 = vrot.lane.b32.xlu1 %v6549_v58, %s6416_s28  ;;  %5797 = vmatmul.mubr.msk.f32.vlgmr.msra.gmra.mrb[0].mxu1 %vm178_vm2, %v6509_v51 }
 0x204   :  { %5801 = vmatprep.mubr.msk.f32.mxu1 %vm6412_vm1, %v6411_v47 }
 0x206   :  { %v254_v59 = vpop.permute.xlu1 %253 }
 0x207   :  { %5800 = vmatpush3.xpose.msk.msra.mxu1 %vm178_vm2, %v254_v59 }
 0x208   :  { %5804 = vmatprep.subr.mxu1 %v6411_v47 }
 0x20a   :  { %5802 = vmatmul.mubr.msk.f32.vlgmr.msra.gmra.mrb[2].mxu1 %vm178_vm2, %v6507_v49 }
 0x20b   :  { %5806 = vmatprep.mubr.msk.f32.mxu1 %vm6412_vm1, %v6411_v47 }
 0x269   :  { %v406_v61 = vpop.permute.xlu1 %405 }
 0x26a   :  { %v330_v60 = vpop.permute.xlu0 %329 }
 0x26b   :  { %5805 = vmatpush3.xpose.msk.msra.mxu1 %vm178_vm2, %v330_v60 }
 0x26c   :  { %5809 = vmatprep.subr.mxu1 %v6411_v47 }
 0x26e   :  { %5807 = vmatmul.mubr.msk.f32.vlgmr.msra.gmra.mrb[4].mxu1 %vm178_vm2, %v6531_v53  ;;  %v482_v62 = vpop.permute.xlu0 %481 }
 0x26f   :  { %5810 = vmatpush3.xpose.msk.msra.mxu1 %vm178_vm2, %v406_v61  ;;  %5815 = vmatpush3.xpose.msk.msra.mxu0 %vm178_vm2, %v482_v62 }
 0x270   :  { %5811 = vmatprep.mubr.msk.f32.mxu1 %vm6412_vm1, %v6411_v47  ;;  %5819 = vmatprep.subr.mxu1 %v6411_v47 }
 0x271   :  { %v558_v63 = vpop.permute.xlu1 %557  ;;  %5824 = vmatprep.subr.mxu0 %v6411_v47 }
 0x272   :  { %5812 = vmatmul.mubr.msk.f32.vlgmr.msra.gmra.mrb[6].mxu1 %vm178_vm2, %v6527_v52  ;;  %5817 = vmatmul.mubr.msk.f32.vlgmr.msra.gmra.mrb[2].mxu0 %vm178_vm2, %v6535_v54  ;;  %v634_v2 = vpop.permute.xlu0 %633 }
 0x273   :  { %5820 = vmatpush3.xpose.msk.msra.mxu1 %vm178_vm2, %v558_v63  ;;  %5825 = vmatpush3.xpose.msk.msra.mxu0 %vm178_vm2, %v634_v2 }
 0x274   :  { %5821 = vmatprep.mubr.msk.f32.mxu1 %vm6412_vm1, %v6411_v47  ;;  %5826 = vmatprep.mubr.msk.f32.mxu0 %vm6412_vm1, %v6411_v47 }
 0x275   :  { %v710_v3 = vpop.permute.xlu1 %709  ;;  %5829 = vmatprep.subr.mxu1 %v6411_v47  ;;  %5834 = vmatprep.subr.mxu0 %v6411_v47 }
 0x276   :  { %5822 = vmatmul.mubr.msk.f32.vlgmr.msra.gmra.mrb[8].mxu1 %vm178_vm2, %v6541_v56  ;;  %5827 = vmatmul.mubr.msk.f32.vlgmr.msra.gmra.mrb[4].mxu0 %vm178_vm2, %v6537_v55 }
 0x277   :  { %5830 = vmatpush3.xpose.msk.msra.mxu1 %vm178_vm2, %v710_v3  ;;  %5831 = vmatprep.mubr.msk.f32.mxu1 %vm6412_vm1, %v6411_v47 }
 0x278   :  { %5839 = vmatprep.subr.mxu1 %v6411_v47  ;;  %5836 = vmatprep.mubr.msk.f32.mxu0 %vm6412_vm1, %v6411_v47 }
 0x27a   :  { %5832 = vmatmul.mubr.msk.f32.vlgmr.msra.gmra.mrb[10].mxu1 %vm178_vm2, %v6549_v58 }
 0x27b   :  { %5841 = vmatprep.mubr.msk.f32.mxu1 %vm6412_vm1, %v6411_v47 }
 0x2d6   :  { %v249_v4 = vpop.f32.mrb[0].mxu1 }
 0x2d7   :  { %v5798_v5 = vpop.f32.mrb[1].mxu1  ;;  %v785_v6 = vsel %vm178_vm2, %v249_v4, -inf }
 0x2d8   :  { %786 = vmax.xlane.f32.xlu0 %v785_v6 }
 0x2dd   :  { %v325_v7 = vpop.f32.mrb[2].mxu1 }
 0x2de   :  { %v5803_v8 = vpop.f32.mrb[3].mxu1  ;;  %v788_v9 = vsel %vm178_vm2, %v325_v7, -inf }
 0x2df   :  { %789 = vmax.xlane.f32.xlu1 %v788_v9 }
 0x341   :  { %v401_v10 = vpop.f32.mrb[4].mxu1 }
 0x342   :  { %v5808_v11 = vpop.f32.mrb[5].mxu1  ;;  %v791_v12 = vsel %vm178_vm2, %v401_v10, -inf }
 0x343   :  { %792 = vmax.xlane.f32.xlu0 %v791_v12 }
 0x345   :  { %v477_v13 = vpop.f32.mrb[6].mxu1  ;;  %v553_v14 = vpop.f32.mrb[2].mxu0 }
 0x346   :  { %v5813_v15 = vpop.f32.mrb[7].mxu1  ;;  %v5818_v16 = vpop.f32.mrb[3].mxu0  ;;  %v794_v17 = vsel %vm178_vm2, %v477_v13, -inf  ;;  %v797_v23 = vsel %vm178_vm2, %v553_v14, -inf }
 0x347   :  { %795 = vmax.xlane.f32.xlu0 %v794_v17 }
 0x349   :  { %v629_v18 = vpop.f32.mrb[8].mxu1  ;;  %v705_v19 = vpop.f32.mrb[4].mxu0 }
 0x34a   :  { %v5823_v20 = vpop.f32.mrb[9].mxu1  ;;  %v5828_v21 = vpop.f32.mrb[5].mxu0  ;;  %v800_v22 = vsel %vm178_vm2, %v629_v18, -inf  ;;  %v803_v27 = vsel %vm178_vm2, %v705_v19, -inf }
 0x34b   :  { %801 = vmax.xlane.f32.xlu1 %v800_v22  ;;  %798 = vmax.xlane.f32.xlu0 %v797_v23 }
 0x34d   :  { %v781_v24 = vpop.f32.mrb[10].mxu1 }
 0x34e   :  { %v5833_v25 = vpop.f32.mrb[11].mxu1  ;;  %v806_v26 = vsel %vm178_vm2, %v781_v24, -inf }
 0x34f   :  { %807 = vmax.xlane.f32.xlu1 %v806_v26  ;;  %804 = vmax.xlane.f32.xlu0 %v803_v27 }
 0x360   :  { %949 = vrot.lane.b32.xlu1 %v6507_v49, %s6417_s29 }
 0x364   :  { %1025 = vrot.lane.b32.xlu1 %v6531_v53, %s6417_s29 }
 0x365   :  { %873 = vrot.lane.b32.xlu0 %v6509_v51, %s6417_s29  ;;  %v787_v29 = vpop.xlane.xlu0 %786 }
 0x366   :  { %v809_v33 = vsub.f32 %v249_v4, %v787_v29 }
 0x368   :  { %1101 = vrot.lane.b32.xlu1 %v6527_v52, %s6417_s29  ;;  %v817_v34 = vmul.f32 1.442695, %v809_v33 }
 0x369   :  { %1177 = vrot.lane.b32.xlu0 %v6535_v54, %s6417_s29 }
 0x36a   :  { %6267 = vpow2.f32 %v817_v34 }
 0x36c   :  { %1253 = vrot.lane.b32.xlu1 %v6541_v56, %s6417_s29  ;;  %v790_v35 = vpop.xlane.xlu1 %789 }
 0x36d   :  { %v810_v36 = vsub.f32 %v325_v7, %v790_v35 }
 0x36f   :  { %v819_v37 = vmul.f32 1.442695, %v810_v36 }
 0x371   :  { %6269 = vpow2.f32 %v819_v37 }
 0x374   :  { %v6619_v38 = vpop.eup %6267 }
 0x375   :  { %v833_v39 = vsel %vm178_vm2, %v6619_v38, 0.0 }
 0x37b   :  { %v6623_v40 = vpop.eup %6269 }
 0x37c   :  { %v836_v41 = vsel %vm178_vm2, %v6623_v40, 0.0 }
 0x388   :  { %834 = vadd.xlane.f32.xlu0 %v833_v39 }
 0x390   :  { %837 = vadd.xlane.f32.xlu1 %v836_v41 }
 0x3d0   :  { %v793_v42 = vpop.xlane.xlu0 %792 }
 0x3d1   :  { %v811_v43 = vsub.f32 %v401_v10, %v793_v42 }
 0x3d3   :  { %v821_v44 = vmul.f32 1.442695, %v811_v43 }
 0x3d4   :  { %v796_v46 = vpop.xlane.xlu0 %795 }
 0x3d5   :  { %6271 = vpow2.f32 %v821_v44  ;;  %v812_v48 = vsub.f32 %v477_v13, %v796_v46 }
 0x3d7   :  { %v823_v49 = vmul.f32 1.442695, %v812_v48 }
 0x3d8   :  { %v802_v50 = vpop.xlane.xlu1 %801  ;;  %v799_v51 = vpop.xlane.xlu0 %798 }
 0x3d9   :  { %6273 = vpow2.f32 %v823_v49  ;;  %v814_v52 = vsub.f32 %v629_v18, %v802_v50  ;;  %v813_v53 = vsub.f32 %v553_v14, %v799_v51 }
 0x3db   :  { %v827_v54 = vmul.f32 1.442695, %v814_v52  ;;  %v825_v56 = vmul.f32 1.442695, %v813_v53 }
 0x3dc   :  { %v808_v57 = vpop.xlane.xlu1 %807  ;;  %v805_v59 = vpop.xlane.xlu0 %804 }
 0x3dd   :  { %6275 = vpow2.f32 %v827_v54  ;;  %v816_v60 = vsub.f32 %v781_v24, %v808_v57  ;;  %v815_v61 = vsub.f32 %v705_v19, %v805_v59  ;;  %v21_v54 = vld [vmem:[%s7391_s1 + $0x20] sm:$0xff]  ;;  %v23_v59 = vld [vmem:[%s7391_s1 + $0x30] sm:$0xff] }
 0x3de   :  { %6277 = vpow2.f32 %v825_v56  ;;  %v22_v56 = vld [vmem:[%s7391_s1 + $0x28] sm:$0xff] }
 0x3df   :  { %v6272_v62 = vpop.eup %6271  ;;  %v831_v63 = vmul.f32 1.442695, %v816_v60  ;;  %v829_v2 = vmul.f32 1.442695, %v815_v61  ;;  %v6163_v57 = vpack.c.bf16 %v22_v56, %v21_v54  ;;  %v24_v60 = vld [vmem:[%s7391_s1 + $0x38] sm:$0xff] }
 0x3e0   :  { %v950_v3 = vpop.permute.xlu1 %949  ;;  %v874_v4 = vpop.permute.xlu0 %873  ;;  %v839_v5 = vsel %vm178_vm2, %v6272_v62, 0.0  ;;  %v6167_v61 = vpack.c.bf16 %v24_v60, %v23_v59 }
 0x3e1   :  { %6279 = vpow2.f32 %v831_v63  ;;  %5840 = vmatpush3.msra.mxu1 %v950_v3  ;;  %840 = vadd.xlane.f32.xlu0 %v839_v5 }
 0x3e2   :  { %6281 = vpow2.f32 %v829_v2  ;;  %5835 = vmatpush3.msra.mxu0 %v874_v4  ;;  %5849 = vmatprep.subr.mxu1 %v6411_v47 }
 0x3e3   :  { %v6274_v6 = vpop.eup %6273  ;;  %5844 = vmatprep.subr.mxu0 %v6411_v47 }
 0x3e4   :  { %v842_v7 = vsel %vm178_vm2, %v6274_v6, 0.0  ;;  %v1026_v16 = vpop.permute.xlu1 %1025  ;;  %v1178_v17 = vpop.permute.xlu0 %1177 }
 0x3e5   :  { %843 = vadd.xlane.f32.xlu1 %v842_v7 }
 0x3e7   :  { %v6276_v8 = vpop.eup %6275 }
 0x3e8   :  { %v6278_v9 = vpop.eup %6277  ;;  %v848_v10 = vsel %vm178_vm2, %v6276_v8, 0.0  ;;  %v1102_v18 = vpop.permute.xlu1 %1101 }
 0x3e9   :  { %849 = vadd.xlane.f32.xlu1 %v848_v10  ;;  %v845_v11 = vsel %vm178_vm2, %v6278_v9, 0.0 }
 0x3ea   :  { %846 = vadd.xlane.f32.xlu0 %v845_v11 }
 0x3eb   :  { %v6633_v12 = vpop.eup %6279 }
 0x3ec   :  { %v6635_v13 = vpop.eup %6281  ;;  %v854_v14 = vsel %vm178_vm2, %v6633_v12, 0.0  ;;  %v1254_v20 = vpop.permute.xlu1 %1253 }
 0x3ed   :  { %855 = vadd.xlane.f32.xlu1 %v854_v14  ;;  %v851_v15 = vsel %vm178_vm2, %v6635_v13, 0.0 }
 0x3ee   :  { %852 = vadd.xlane.f32.xlu0 %v851_v15 }
 0x3fe   :  { %1405 = vrot.lane.b32.xlu1 %v6549_v58, %s6417_s29 }
 0x404   :  { %1329 = vrot.lane.b32.xlu0 %v6537_v55, %s6417_s29 }
 0x415   :  { %v835_v19 = vpop.xlane.xlu0 %834 }
 0x416   :  { %6283 = vrcp.f32 %v835_v19 }
 0x41d   :  { %v838_v21 = vpop.xlane.xlu1 %837 }
 0x41e   :  { %6285 = vrcp.f32 %v838_v21 }
 0x420   :  { %v6284_v22 = vpop.eup %6283 }
 0x421   :  { %v865_v23 = vmul.f32 %v6284_v22, %v6619_v38 }
 0x423   :  { %5837 = vmatmul.mubr.msk.f32.vlgmr.msra.gmra.mrb[6].mxu0 %vm178_vm2, %v865_v23 }
 0x424   :  { %5845 = vmatpush3.msra.mxu0 %v1026_v16  ;;  %5846 = vmatprep.mubr.msk.f32.mxu0 %vm6412_vm1, %v6411_v47 }
 0x425   :  { %5854 = vmatprep.subr.mxu0 %v6411_v47 }
 0x428   :  { %v6286_v55 = vpop.eup %6285 }
 0x429   :  { %v866_v58 = vmul.f32 %v6286_v55, %v6623_v40  ;;  %v6700_v55 = vsub.s32 3, %v6475_v28 }
 0x42b   :  { %5842 = vmatmul.mubr.msk.f32.vlgmr.msra.gmra.mrb[12].mxu1 %vm178_vm2, %v866_v58  ;;  %v1599_v58 = vrot.slane %v6483_v31, %v6700_v55 }
 0x42c   :  { %5850 = vmatpush3.msra.mxu1 %v1102_v18  ;;  %5851 = vmatprep.mubr.msk.f32.mxu1 %vm6412_vm1, %v6411_v47 }
 0x42d   :  { %5859 = vmatprep.subr.mxu1 %v6411_v47 }
 0x46e   :  { %v841_v24 = vpop.xlane.xlu0 %840 }
 0x46f   :  { %6287 = vrcp.f32 %v841_v24 }
 0x472   :  { %v844_v25 = vpop.xlane.xlu1 %843 }
 0x473   :  { %6289 = vrcp.f32 %v844_v25 }
 0x476   :  { %v850_v26 = vpop.xlane.xlu1 %849 }
 0x477   :  { %6291 = vrcp.f32 %v850_v26  ;;  %v847_v27 = vpop.xlane.xlu0 %846 }
 0x478   :  { %6293 = vrcp.f32 %v847_v27 }
 0x479   :  { %v6288_v29 = vpop.eup %6287 }
 0x47a   :  { %v856_v33 = vpop.xlane.xlu1 %855  ;;  %v867_v34 = vmul.f32 %v6288_v29, %v6272_v62 }
 0x47b   :  { %6295 = vrcp.f32 %v856_v33  ;;  %v853_v35 = vpop.xlane.xlu0 %852 }
 0x47c   :  { %6297 = vrcp.f32 %v853_v35  ;;  %5847 = vmatmul.mubr.msk.f32.vlgmr.msra.gmra.mrb[8].mxu0 %vm178_vm2, %v867_v34 }
 0x47d   :  { %v6290_v36 = vpop.eup %6289  ;;  %5855 = vmatpush3.msra.mxu0 %v1178_v17  ;;  %5856 = vmatprep.mubr.msk.f32.mxu0 %vm6412_vm1, %v6411_v47 }
 0x47e   :  { %v868_v37 = vmul.f32 %v6290_v36, %v6274_v6  ;;  %5864 = vmatprep.subr.mxu0 %v6411_v47  ;;  %v1406_v42 = vpop.permute.xlu1 %1405 }
 0x47f   :  { %v1330_v44 = vpop.permute.xlu0 %1329 }
 0x480   :  { %5852 = vmatmul.mubr.msk.f32.vlgmr.msra.gmra.mrb[14].mxu1 %vm178_vm2, %v868_v37 }
 0x481   :  { %v6292_v38 = vpop.eup %6291  ;;  %5860 = vmatpush3.msra.mxu1 %v1254_v20  ;;  %5861 = vmatprep.mubr.msk.f32.mxu1 %vm6412_vm1, %v6411_v47 }
 0x482   :  { %v6294_v39 = vpop.eup %6293  ;;  %5869 = vmatprep.subr.mxu1 %v6411_v47  ;;  %v870_v40 = vmul.f32 %v6292_v38, %v6276_v8  ;;  %v25_v38 = vld [vmem:[%s7391_s1 + $0x40] sm:$0xff] }
 0x483   :  { %v869_v41 = vmul.f32 %v6294_v39, %v6278_v9  ;;  %v26_v39 = vld [vmem:[%s7391_s1 + $0x48] sm:$0xff] }
 0x484   :  { %5862 = vmatmul.mubr.msk.f32.vlgmr.msra.gmra.mrb[16].mxu1 %vm178_vm2, %v870_v40  ;;  %v27_v40 = vld [vmem:[%s7391_s1 + $0x50] sm:$0xff] }
 0x485   :  { %v6296_v43 = vpop.eup %6295  ;;  %5857 = vmatmul.mubr.msk.f32.vlgmr.msra.gmra.mrb[10].mxu0 %vm178_vm2, %v869_v41  ;;  %5870 = vmatpush3.msra.mxu1 %v1406_v42  ;;  %v6171_v41 = vpack.c.bf16 %v26_v39, %v25_v38  ;;  %v28_v42 = vld [vmem:[%s7391_s1 + $0x58] sm:$0xff] }
 0x486   :  { %v6298_v46 = vpop.eup %6297  ;;  %5865 = vmatpush3.msra.mxu0 %v1330_v44  ;;  %5866 = vmatprep.mubr.msk.f32.mxu0 %vm6412_vm1, %v6411_v47  ;;  %v872_v48 = vmul.f32 %v6296_v43, %v6633_v12  ;;  %v6175_v43 = vpack.c.bf16 %v28_v42, %v27_v40 }
 0x487   :  { %5871 = vmatprep.mubr.msk.f32.mxu1 %vm6412_vm1, %v6411_v47  ;;  %v871_v49 = vmul.f32 %v6298_v46, %v6635_v13  ;;  %6164 = vmatprep.subr.bf16.mxu0 %v6163_v57 }
 0x488   :  { %5872 = vmatmul.mubr.msk.f32.vlgmr.msra.gmra.mrb[18].mxu1 %vm178_vm2, %v872_v48  ;;  %6172 = vmatprep.subr.bf16.mxu1 %v6171_v41 }
 0x489   :  { %5867 = vmatmul.mubr.msk.f32.vlgmr.msra.gmra.mrb[12].mxu0 %vm178_vm2, %v871_v49  ;;  %6174 = vmatpush3.bf16.msra.mxu1 %v6171_v41 }
 0x48a   :  { %6166 = vmatpush3.bf16.msra.mxu0 %v6163_v57  ;;  %6176 = vmatprep.subr.bf16.mxu1 %v6175_v43 }
 0x48b   :  { %6168 = vmatprep.subr.bf16.mxu0 %v6167_v61 }
 0x48d   :  { %6178 = vmatpush3.bf16.msra.mxu1 %v6175_v43  ;;  %v5516_v43 = vld [vmem:[%s7391_s1 + $0x80] sm:$0xff] }
 0x48e   :  { %6170 = vmatpush3.bf16.msra.mxu0 %v6167_v61 }
 0x4f6   :  { %v945_v50 = vpop.f32.mrb[6].mxu0 }
 0x4f7   :  { %v5838_v51 = vpop.f32.mrb[7].mxu0 }
 0x4fe   :  { %v1021_v52 = vpop.f32.mrb[12].mxu1 }
 0x4ff   :  { %v5843_v53 = vpop.f32.mrb[13].mxu1 }
 0x54f   :  { %v1097_v62 = vpop.f32.mrb[8].mxu0 }
 0x550   :  { %1483 = vrot.lane.b32.xlu0 %v1097_v62, %s6418_s11  ;;  %v5848_v63 = vpop.f32.mrb[9].mxu0  ;;  %v6733_v62 = vsub.s32 4, %v6475_v28 }
 0x551   :  { %v6736_v63 = vsub.s32 5, %v6475_v28 }
 0x553   :  { %v1173_v2 = vpop.f32.mrb[14].mxu1 }
 0x554   :  { %1485 = vrot.lane.b32.xlu1 %v1173_v2, %s6418_s11  ;;  %v5853_v3 = vpop.f32.mrb[15].mxu1 }
 0x555   :  { %v1635_v3 = vrot.slane %v6483_v31, %v6733_v62 }
 0x557   :  { %v1325_v4 = vpop.f32.mrb[16].mxu1 }
 0x558   :  { %v1249_v5 = vpop.f32.mrb[10].mxu0  ;;  %1493 = vrot.lane.b32.xlu1 %v1325_v4, %s6419_s12  ;;  %v5863_v6 = vpop.f32.mrb[17].mxu1 }
 0x559   :  { %1491 = vrot.lane.b32.xlu0 %v1249_v5, %s6419_s12  ;;  %v5858_v7 = vpop.f32.mrb[11].mxu0  ;;  %v1641_v6 = vrot.slane %v6483_v31, %v6736_v63 }
 0x55b   :  { %v1477_v8 = vpop.f32.mrb[18].mxu1 }
 0x55c   :  { %v1401_v9 = vpop.f32.mrb[12].mxu0  ;;  %1501 = vrot.lane.b32.xlu1 %v1477_v8, %s6420_s13  ;;  %v5873_v10 = vpop.f32.mrb[19].mxu1 }
 0x55d   :  { %1499 = vrot.lane.b32.xlu0 %v1401_v9, %s6420_s13  ;;  %v5868_v11 = vpop.f32.mrb[13].mxu0 }
 0x5c2   :  { %v1484_v13 = vpop.permute.xlu0 %1483 }
 0x5c3   :  { %v1505_v17 = vsel %vm178_vm2, %v945_v50, %v1484_v13 }
 0x5c6   :  { %v1486_v12 = vpop.permute.xlu1 %1485 }
 0x5c7   :  { %v1506_v16 = vsel %vm178_vm2, %v1021_v52, %v1486_v12 }
 0x5ca   :  { %v1494_v14 = vpop.permute.xlu1 %1493 }
 0x5cb   :  { %v1492_v15 = vpop.permute.xlu0 %1491  ;;  %v1509_v18 = vsel %vm1507_vm3, %v1506_v16, %v1494_v14  ;;  %v29_v14 = vld [vmem:[%s7391_s1 + $0x60] sm:$0xff] }
 0x5cc   :  { %v1508_v20 = vsel %vm1507_vm3, %v1505_v17, %v1492_v15  ;;  %v30_v15 = vld [vmem:[%s7391_s1 + $0x68] sm:$0xff]  ;;  %v31_v17 = vld [vmem:[%s7391_s1 + $0x70] sm:$0xff] }
 0x5cd   :  { %v6179_v16 = vpack.c.bf16 %v30_v15, %v29_v14 }
 0x5ce   :  { %v1502_v19 = vpop.permute.xlu1 %1501 }
 0x5cf   :  { %v1512_v21 = vsel %vm1510_vm4, %v1509_v18, %v1502_v19  ;;  %v1500_v22 = vpop.permute.xlu0 %1499  ;;  %6180 = vmatprep.subr.bf16.mxu0 %v6179_v16  ;;  %v32_v18 = vld [vmem:[%s7391_s1 + $0x78] sm:$0xff] }
 0x5d0   :  { %v1511_v23 = vsel %vm1510_vm4, %v1508_v20, %v1500_v22  ;;  %v6183_v19 = vpack.c.bf16 %v32_v18, %v31_v17  ;;  %v6760_v20 = vsub.s32 6, %v6475_v28 }
 0x5d1   :  { %5882 = vmatprep.mubr.msk.f32.mxu0 %vm34_vm0, %v1511_v23 }
 0x5d2   :  { %5883 = vmatmul.mubr.msk.f32.vlgmr.msra.gmra.mrb[14].mxu0 %vm34_vm0, %v1512_v21  ;;  %v1647_v21 = vrot.slane %v6483_v31, %v6760_v20 }
 0x5d3   :  { %6182 = vmatpush3.bf16.msra.mxu0 %v6179_v16 }
 0x5d4   :  { %6184 = vmatprep.subr.bf16.mxu0 %v6183_v19 }
 0x5d7   :  { %6186 = vmatpush3.bf16.msra.mxu0 %v6183_v19 }
 0x5d8   :  { %5918 = vmatprep.subr.mxu0 %v6411_v47 }
 0x6a5   :  { %v5884_v24 = vpop.f32.mrb[14].mxu0 }
 0x6a6   :  { %v1595_v25 = vadd.f32 %v5884_v24, %v6451_v1  ;;  %v1585_v26 = vpop.f32.mrb[15].mxu0 }
 0x6a7   :  { %v1594_v27 = vadd.f32 %v1585_v26, %v6446_v0 }
 0x6a8   :  { %v6706_v29 = vadd.f32 %v1599_v58, %v1595_v25 }
 0x6a9   :  { %v6708_v33 = vadd.f32 %v1599_v58, %v1594_v27 }
 0x6aa   :  { %v1605_v34 = vsel %vm34_vm0, %v6706_v29, 0.0  ;;  %v1609_v0 = vmul.f32 %v6706_v29, %v6706_v29 }
 0x6ab   :  { %1606 = vadd.xlane.f32.xlu1 %v1605_v34  ;;  %v1602_v35 = vsel %vm34_vm0, %v6708_v33, 0.0  ;;  %v1608_v36 = vmul.f32 %v6708_v33, %v6708_v33 }
 0x6ac   :  { %1603 = vadd.xlane.f32.xlu0 %v1602_v35  ;;  %v1613_v37 = vsel %vm34_vm0, %v1609_v0, 0.0  ;;  %v6769_v35 = vsub.s32 7, %v6475_v28 }
 0x6ad   :  { %v1610_v1 = vsel %vm34_vm0, %v1608_v36, 0.0 }
 0x6ae   :  { %v1736_v36 = vrot.slane %v6483_v31, %v6769_v35 }
 0x6b0   :  { %1611 = vadd.xlane.f32.xlu0 %v1610_v1 }
 0x6b4   :  { %1614 = vadd.xlane.f32.xlu0 %v1613_v37 }
 0x738   :  { %v1607_v48 = vpop.xlane.xlu1 %1606 }
 0x739   :  { %v1604_v44 = vpop.xlane.xlu0 %1603  ;;  %v1617_v50 = vmul.f32 0.03125, %v1607_v48 }
 0x73a   :  { %v1616_v46 = vmul.f32 0.03125, %v1604_v44  ;;  %v5517_v44 = vld [vmem:[%s7391_s1 + $0x88] sm:$0xff] }
 0x73b   :  { %v1621_v56 = vmul.f32 %v1617_v50, %v1617_v50  ;;  %v1625_v7 = vsub.f32 %v6706_v29, %v1617_v50  ;;  %v6187_v48 = vpack.c.bf16 %v5517_v44, %v5516_v43 }
 0x73c   :  { %v1620_v51 = vmul.f32 %v1616_v46, %v1616_v46  ;;  %v1624_v2 = vsub.f32 %v6708_v33, %v1616_v46  ;;  %v5518_v46 = vld [vmem:[%s7391_s1 + $0x90] sm:$0xff] }
 0x73d   :  { %v1612_v49 = vpop.xlane.xlu0 %1611  ;;  %6188 = vmatprep.subr.bf16.mxu1 %v6187_v48 }
 0x73e   :  { %v1618_v52 = vmul.f32 0.03125, %v1612_v49  ;;  %v5519_v49 = vld [vmem:[%s7391_s1 + $0x98] sm:$0xff] }
 0x73f   :  { %v6191_v50 = vpack.c.bf16 %v5519_v49, %v5518_v46 }
 0x740   :  { %v1622_v53 = vsub.f32 %v1618_v52, %v1620_v51 }
 0x741   :  { %v1615_v54 = vpop.xlane.xlu0 %1614 }
 0x742   :  { %v1626_v57 = vadd.f32 1e-05, %v1622_v53  ;;  %v1619_v59 = vmul.f32 0.03125, %v1615_v54 }
 0x744   :  { %6299 = vrsqrt.f32 %v1626_v57  ;;  %v1623_v60 = vsub.f32 %v1619_v59, %v1621_v56 }
 0x746   :  { %v1627_v61 = vadd.f32 1e-05, %v1623_v60 }
 0x748   :  { %6301 = vrsqrt.f32 %v1627_v61 }
 0x74e   :  { %v6300_v4 = vpop.eup %6299 }
 0x74f   :  { %v1630_v5 = vmul.f32 %v6300_v4, %v1624_v2 }
 0x751   :  { %v1636_v8 = vmul.f32 %v1635_v3, %v1630_v5 }
 0x752   :  { %v6302_v9 = vpop.eup %6301 }
 0x753   :  { %v1631_v10 = vmul.f32 %v6302_v9, %v1625_v7  ;;  %v1642_v11 = vadd.f32 %v1641_v6, %v1636_v8  ;;  %v6805_v7 = vld [vmem:[%s7392_s2 + $0x8] sm:$0xff] }
 0x754   :  { %v1872_v9 = vrot.slane %v6805_v7, %v6478_v30  ;;  %v1878_v15 = vrot.slane %v6805_v7, %v6486_v32 }
 0x755   :  { %v1637_v12 = vmul.f32 %v1635_v3, %v1631_v10  ;;  %5893 = vmatprep.mubr.msk.f32.mxu1 %vm34_vm0, %v1642_v11 }
 0x757   :  { %v1643_v13 = vadd.f32 %v1641_v6, %v1637_v12 }
 0x759   :  { %5894 = vmatmul.mubr.msk.f32.vlgmr.msra.gmra.mrb[20].mxu1 %vm34_vm0, %v1643_v13 }
 0x75a   :  { %6190 = vmatpush3.bf16.msra.mxu1 %v6187_v48 }
 0x75b   :  { %6192 = vmatprep.subr.bf16.mxu1 %v6191_v50 }
 0x75e   :  { %6194 = vmatpush3.bf16.msra.mxu1 %v6191_v50 }
 0x75f   :  { %5923 = vmatprep.subr.mxu1 %v6411_v47 }
 0x82c   :  { %v5895_v22 = vpop.f32.mrb[20].mxu1 }
 0x82d   :  { %v1726_v23 = vadd.f32 %v5895_v22, %v1647_v21  ;;  %v1720_v58 = vpop.f32.mrb[21].mxu1 }
 0x82e   :  { %v1721_v24 = vadd.f32 %v1720_v58, %v1647_v21  ;;  %v1884_v21 = vrot.slane %v6805_v7, %v6497_v45 }
 0x82f   :  { %v1730_v25 = vmul.f32 0.1, %v1726_v23 }
 0x830   :  { %v1729_v26 = vmul.f32 0.1, %v1721_v24 }
 0x831   :  { %v1732_v34 = vmax.f32 %v1726_v23, %v1730_v25 }
 0x832   :  { %v1731_v27 = vmax.f32 %v1721_v24, %v1729_v26 }
 0x834   :  { %5904 = vmatprep.mubr.msk.f32.mxu0 %vm34_vm0, %v1731_v27 }
 0x835   :  { %5905 = vmatmul.mubr.msk.f32.vlgmr.msra.gmra.mrb[16].mxu0 %vm34_vm0, %v1732_v34 }
 0x836   :  { %5920 = vmatprep.mubr.msk.f32.mxu0 %vm6412_vm1, %v6411_v47 }
 0x908   :  { %v5906_v1 = vpop.f32.mrb[16].mxu0 }
 0x909   :  { %v1815_v0 = vadd.f32 %v5906_v1, %v1736_v36  ;;  %v1809_v37 = vpop.f32.mrb[17].mxu0 }
 0x90a   :  { %v1810_v38 = vadd.f32 %v1809_v37, %v1736_v36 }
 0x90b   :  { %v6774_v39 = vadd.f32 %v1815_v0, %v6706_v29 }
 0x90c   :  { %v6777_v40 = vadd.f32 %v1810_v38, %v6708_v33 }
 0x90d   :  { %v1842_v41 = vsel %vm34_vm0, %v6774_v39, 0.0  ;;  %v1846_v28 = vmul.f32 %v6774_v39, %v6774_v39 }
 0x90e   :  { %1843 = vadd.xlane.f32.xlu1 %v1842_v41  ;;  %v1839_v31 = vsel %vm34_vm0, %v6777_v40, 0.0  ;;  %v1845_v42 = vmul.f32 %v6777_v40, %v6777_v40 }
 0x90f   :  { %1840 = vadd.xlane.f32.xlu0 %v1839_v31  ;;  %v1850_v29 = vsel %vm34_vm0, %v1846_v28, 0.0 }
 0x910   :  { %v1847_v33 = vsel %vm34_vm0, %v1845_v42, 0.0 }
 0x912   :  { %1851 = vadd.xlane.f32.xlu1 %v1850_v29 }
 0x913   :  { %1848 = vadd.xlane.f32.xlu0 %v1847_v33 }
 0x99b   :  { %v1844_v51 = vpop.xlane.xlu1 %1843 }
 0x99c   :  { %v1854_v52 = vmul.f32 0.03125, %v1844_v51  ;;  %v1841_v53 = vpop.xlane.xlu0 %1840 }
 0x99d   :  { %v1853_v54 = vmul.f32 0.03125, %v1841_v53 }
 0x99e   :  { %v1858_v57 = vmul.f32 %v1854_v52, %v1854_v52  ;;  %v1862_v8 = vsub.f32 %v6774_v39, %v1854_v52 }
 0x99f   :  { %v1852_v56 = vpop.xlane.xlu1 %1851  ;;  %v1857_v61 = vmul.f32 %v1853_v54, %v1853_v54  ;;  %v1861_v11 = vsub.f32 %v6777_v40, %v1853_v54 }
 0x9a0   :  { %v1856_v59 = vmul.f32 0.03125, %v1852_v56  ;;  %v1849_v60 = vpop.xlane.xlu0 %1848 }
 0x9a1   :  { %v1855_v2 = vmul.f32 0.03125, %v1849_v60 }
 0x9a2   :  { %v1860_v3 = vsub.f32 %v1856_v59, %v1858_v57 }
 0x9a3   :  { %v1859_v4 = vsub.f32 %v1855_v2, %v1857_v61 }
 0x9a4   :  { %v1864_v5 = vadd.f32 1e-05, %v1860_v3 }
 0x9a5   :  { %v1863_v6 = vadd.f32 1e-05, %v1859_v4 }
 0x9a6   :  { %6303 = vrsqrt.f32 %v1864_v5 }
 0x9a7   :  { %6305 = vrsqrt.f32 %v1863_v6 }
 0x9b0   :  { %v6304_v10 = vpop.eup %6303 }
 0x9b1   :  { %v6306_v12 = vpop.eup %6305  ;;  %v1868_v13 = vmul.f32 %v6304_v10, %v1862_v8 }
 0x9b2   :  { %v1867_v14 = vmul.f32 %v6306_v12, %v1861_v11 }
 0x9b3   :  { %v1874_v16 = vmul.f32 %v1872_v9, %v1868_v13 }
 0x9b4   :  { %v1873_v17 = vmul.f32 %v1872_v9, %v1867_v14 }
 0x9b5   :  { %v1880_v19 = vadd.f32 %v1878_v15, %v1874_v16 }
 0x9b6   :  { %v1879_v18 = vadd.f32 %v1878_v15, %v1873_v17 }
 0x9b8   :  { %5915 = vmatprep.mubr.msk.f32.mxu1 %vm34_vm0, %v1879_v18 }
 0x9b9   :  { %5916 = vmatmul.mubr.msk.f32.vlgmr.msra.gmra.mrb[22].mxu1 %vm34_vm0, %v1880_v19 }
 0x9ba   :  { %5925 = vmatprep.mubr.msk.f32.mxu1 %vm6412_vm1, %v6411_v47 }
 0xa8c   :  { %v5917_v22 = vpop.f32.mrb[22].mxu1 }
 0xa8d   :  { %v6819_v23 = vadd.f32 %v5917_v22, %v1884_v21  ;;  %v1957_v58 = vpop.f32.mrb[23].mxu1 }
 0xa8e   :  { %v6821_v24 = vadd.f32 %v1957_v58, %v1884_v21 }
 0xa8f   :  { %1970 = vrot.lane.b32.xlu1 %v6819_v23, %s6413_s25 }
 0xa90   :  { %1968 = vrot.lane.b32.xlu0 %v6821_v24, %s6413_s25 }
 0xa93   :  { %1972 = vrot.lane.b32.xlu1 %v6821_v24, %s6414_s26 }
 0xa94   :  { %1976 = vrot.lane.b32.xlu0 %v6821_v24, %s6415_s27 }
 0xa97   :  { %1974 = vrot.lane.b32.xlu1 %v6819_v23, %s6414_s26 }
 0xa98   :  { %1980 = vrot.lane.b32.xlu0 %v6821_v24, %s6416_s28 }
 0xa9b   :  { %1978 = vrot.lane.b32.xlu1 %v6819_v23, %s6415_s27 }
 0xa9f   :  { %2056 = vrot.lane.b32.xlu1 %v6819_v23, %s6416_s28 }
 0xb01   :  { %v6839_v25 = vpop.permute.xlu1 %1970 }
 0xb02   :  { %2208 = vrot.lane.b32.xlu1 %v6839_v25, %s6416_s28  ;;  %v6843_v26 = vpop.permute.xlu0 %1968 }
 0xb03   :  { %2132 = vrot.lane.b32.xlu0 %v6843_v26, %s6416_s28 }
 0xb05   :  { %v6847_v27 = vpop.permute.xlu1 %1972 }
 0xb06   :  { %v6849_v34 = vpop.permute.xlu0 %1976 }
 0xb07   :  { %2284 = vrot.lane.b32.xlu0 %v6847_v27, %s6416_s28 }
 0xb09   :  { %v6853_v36 = vpop.permute.xlu1 %1974 }
 0xb0a   :  { %2360 = vrot.lane.b32.xlu1 %v6853_v36, %s6416_s28  ;;  %v1981_v1 = vpop.permute.xlu0 %1980 }
 0xb0b   :  { %2436 = vrot.lane.b32.xlu0 %v6849_v34, %s6416_s28  ;;  %5919 = vmatpush3.xpose.msk.msra.mxu0 %vm178_vm2, %v1981_v1 }
 0xb0c   :  { %5928 = vmatprep.subr.mxu0 %v6411_v47 }
 0xb0d   :  { %v6861_v0 = vpop.permute.xlu1 %1978 }
 0xb0e   :  { %2512 = vrot.lane.b32.xlu1 %v6861_v0, %s6416_s28  ;;  %5921 = vmatmul.mubr.msk.f32.vlgmr.msra.gmra.mrb[18].mxu0 %vm178_vm2, %v6821_v24 }
 0xb0f   :  { %5930 = vmatprep.mubr.msk.f32.mxu0 %vm6412_vm1, %v6411_v47 }
 0xb11   :  { %v2057_v37 = vpop.permute.xlu1 %2056 }
 0xb12   :  { %5924 = vmatpush3.xpose.msk.msra.mxu1 %vm178_vm2, %v2057_v37 }
 0xb13   :  { %5933 = vmatprep.subr.mxu1 %v6411_v47 }
 0xb15   :  { %5926 = vmatmul.mubr.msk.f32.vlgmr.msra.gmra.mrb[24].mxu1 %vm178_vm2, %v6819_v23 }
 0xb16   :  { %5935 = vmatprep.mubr.msk.f32.mxu1 %vm6412_vm1, %v6411_v47 }
 0xb74   :  { %v2209_v38 = vpop.permute.xlu1 %2208 }
 0xb75   :  { %5934 = vmatpush3.xpose.msk.msra.mxu1 %vm178_vm2, %v2209_v38  ;;  %v2133_v41 = vpop.permute.xlu0 %2132 }
 0xb76   :  { %5929 = vmatpush3.xpose.msk.msra.mxu0 %vm178_vm2, %v2133_v41  ;;  %5943 = vmatprep.subr.mxu1 %v6411_v47 }
 0xb77   :  { %5938 = vmatprep.subr.mxu0 %v6411_v47 }
 0xb78   :  { %5936 = vmatmul.mubr.msk.f32.vlgmr.msra.gmra.mrb[26].mxu1 %vm178_vm2, %v6839_v25 }
 0xb79   :  { %5931 = vmatmul.mubr.msk.f32.vlgmr.msra.gmra.mrb[20].mxu0 %vm178_vm2, %v6843_v26  ;;  %v2285_v28 = vpop.permute.xlu0 %2284  ;;  %5945 = vmatprep.mubr.msk.f32.mxu1 %vm6412_vm1, %v6411_v47 }
 0xb7a   :  { %5939 = vmatpush3.xpose.msk.msra.mxu0 %vm178_vm2, %v2285_v28  ;;  %5940 = vmatprep.mubr.msk.f32.mxu0 %vm6412_vm1, %v6411_v47 }
 0xb7b   :  { %5948 = vmatprep.subr.mxu0 %v6411_v47 }
 0xb7c   :  { %v2361_v31 = vpop.permute.xlu1 %2360 }
 0xb7d   :  { %5941 = vmatmul.mubr.msk.f32.vlgmr.msra.gmra.mrb[22].mxu0 %vm178_vm2, %v6847_v27  ;;  %5944 = vmatpush3.xpose.msk.msra.mxu1 %vm178_vm2, %v2361_v31  ;;  %v2437_v42 = vpop.permute.xlu0 %2436 }
 0xb7e   :  { %5949 = vmatpush3.xpose.msk.msra.mxu0 %vm178_vm2, %v2437_v42  ;;  %5953 = vmatprep.subr.mxu1 %v6411_v47 }
 0xb7f   :  { %5950 = vmatprep.mubr.msk.f32.mxu0 %vm6412_vm1, %v6411_v47  ;;  %5958 = vmatprep.subr.mxu0 %v6411_v47 }
 0xb80   :  { %5946 = vmatmul.mubr.msk.f32.vlgmr.msra.gmra.mrb[28].mxu1 %vm178_vm2, %v6853_v36  ;;  %v2513_v29 = vpop.permute.xlu1 %2512 }
 0xb81   :  { %5951 = vmatmul.mubr.msk.f32.vlgmr.msra.gmra.mrb[24].mxu0 %vm178_vm2, %v6849_v34  ;;  %5954 = vmatpush3.xpose.msk.msra.mxu1 %vm178_vm2, %v2513_v29 }
 0xb82   :  { %5955 = vmatprep.mubr.msk.f32.mxu1 %vm6412_vm1, %v6411_v47  ;;  %5963 = vmatprep.subr.mxu1 %v6411_v47 }
 0xb83   :  { %5960 = vmatprep.mubr.msk.f32.mxu0 %vm6412_vm1, %v6411_v47 }
 0xb84   :  { %5956 = vmatmul.mubr.msk.f32.vlgmr.msra.gmra.mrb[30].mxu1 %vm178_vm2, %v6861_v0 }
 0xb85   :  { %5965 = vmatprep.mubr.msk.f32.mxu1 %vm6412_vm1, %v6411_v47 }
 0xbe1   :  { %v2052_v33 = vpop.f32.mrb[18].mxu0 }
 0xbe2   :  { %v5922_v43 = vpop.f32.mrb[19].mxu0  ;;  %v2588_v44 = vsel %vm178_vm2, %v2052_v33, -inf }
 0xbe3   :  { %2589 = vmax.xlane.f32.xlu0 %v2588_v44 }
 0xbe8   :  { %v2128_v46 = vpop.f32.mrb[24].mxu1 }
 0xbe9   :  { %v5927_v48 = vpop.f32.mrb[25].mxu1  ;;  %v2591_v49 = vsel %vm178_vm2, %v2128_v46, -inf }
 0xbea   :  { %2592 = vmax.xlane.f32.xlu1 %v2591_v49 }
 0xc4b   :  { %v2280_v50 = vpop.f32.mrb[26].mxu1 }
 0xc4c   :  { %v2204_v51 = vpop.f32.mrb[20].mxu0  ;;  %v5937_v52 = vpop.f32.mrb[27].mxu1  ;;  %v2597_v53 = vsel %vm178_vm2, %v2280_v50, -inf }
 0xc4d   :  { %2598 = vmax.xlane.f32.xlu0 %v2597_v53  ;;  %v5932_v54 = vpop.f32.mrb[21].mxu0  ;;  %v2594_v57 = vsel %vm178_vm2, %v2204_v51, -inf }
 0xc50   :  { %v2356_v56 = vpop.f32.mrb[22].mxu0 }
 0xc51   :  { %2595 = vmax.xlane.f32.xlu0 %v2594_v57  ;;  %v5942_v59 = vpop.f32.mrb[23].mxu0  ;;  %v2600_v4 = vsel %vm178_vm2, %v2356_v56, -inf }
 0xc53   :  { %v2432_v60 = vpop.f32.mrb[28].mxu1 }
 0xc54   :  { %v5947_v61 = vpop.f32.mrb[29].mxu1  ;;  %v2508_v2 = vpop.f32.mrb[24].mxu0  ;;  %v2603_v3 = vsel %vm178_vm2, %v2432_v60, -inf }
 0xc55   :  { %2604 = vmax.xlane.f32.xlu1 %v2603_v3  ;;  %2601 = vmax.xlane.f32.xlu0 %v2600_v4  ;;  %v5952_v5 = vpop.f32.mrb[25].mxu0  ;;  %v2606_v10 = vsel %vm178_vm2, %v2508_v2, -inf }
 0xc57   :  { %v2584_v6 = vpop.f32.mrb[30].mxu1 }
 0xc58   :  { %v5957_v8 = vpop.f32.mrb[31].mxu1  ;;  %v2609_v9 = vsel %vm178_vm2, %v2584_v6, -inf }
 0xc59   :  { %2610 = vmax.xlane.f32.xlu1 %v2609_v9  ;;  %2607 = vmax.xlane.f32.xlu0 %v2606_v10 }
 0xc6a   :  { %2752 = vrot.lane.b32.xlu1 %v6819_v23, %s6417_s29 }
 0xc6e   :  { %2828 = vrot.lane.b32.xlu1 %v6843_v26, %s6417_s29 }
 0xc6f   :  { %2676 = vrot.lane.b32.xlu0 %v6821_v24, %s6417_s29 }
 0xc70   :  { %v2590_v11 = vpop.xlane.xlu0 %2589 }
 0xc71   :  { %v2612_v12 = vsub.f32 %v2052_v33, %v2590_v11 }
 0xc72   :  { %2904 = vrot.lane.b32.xlu1 %v6839_v25, %s6417_s29 }
 0xc73   :  { %2980 = vrot.lane.b32.xlu0 %v6847_v27, %s6417_s29  ;;  %v2620_v13 = vmul.f32 1.442695, %v2612_v12 }
 0xc75   :  { %6307 = vpow2.f32 %v2620_v13 }
 0xc76   :  { %3056 = vrot.lane.b32.xlu1 %v6853_v36, %s6417_s29 }
 0xc77   :  { %v2593_v14 = vpop.xlane.xlu1 %2592 }
 0xc78   :  { %v2613_v15 = vsub.f32 %v2128_v46, %v2593_v14 }
 0xc7a   :  { %v2622_v16 = vmul.f32 1.442695, %v2613_v15 }
 0xc7c   :  { %6309 = vpow2.f32 %v2622_v16 }
 0xc7f   :  { %v6931_v17 = vpop.eup %6307 }
 0xc80   :  { %v2636_v18 = vsel %vm178_vm2, %v6931_v17, 0.0 }
 0xc86   :  { %v6935_v19 = vpop.eup %6309 }
 0xc87   :  { %v2639_v21 = vsel %vm178_vm2, %v6935_v19, 0.0 }
 0xc92   :  { %2637 = vadd.xlane.f32.xlu0 %v2636_v18 }
 0xc9a   :  { %2640 = vadd.xlane.f32.xlu1 %v2639_v21 }
 0xcda   :  { %v2599_v22 = vpop.xlane.xlu0 %2598 }
 0xcdb   :  { %v2615_v23 = vsub.f32 %v2280_v50, %v2599_v22 }
 0xcdd   :  { %v2626_v58 = vmul.f32 1.442695, %v2615_v23 }
 0xcde   :  { %v2596_v24 = vpop.xlane.xlu0 %2595 }
 0xcdf   :  { %6311 = vpow2.f32 %v2626_v58  ;;  %v2614_v25 = vsub.f32 %v2204_v51, %v2596_v24 }
 0xce1   :  { %v2624_v26 = vmul.f32 1.442695, %v2614_v25 }
 0xce2   :  { %v2605_v27 = vpop.xlane.xlu1 %2604  ;;  %v2602_v36 = vpop.xlane.xlu0 %2601 }
 0xce3   :  { %6313 = vpow2.f32 %v2624_v26  ;;  %v2617_v1 = vsub.f32 %v2432_v60, %v2605_v27  ;;  %v2616_v37 = vsub.f32 %v2356_v56, %v2602_v36 }
 0xce5   :  { %v2630_v38 = vmul.f32 1.442695, %v2617_v1  ;;  %v2628_v41 = vmul.f32 1.442695, %v2616_v37 }
 0xce6   :  { %v2611_v28 = vpop.xlane.xlu1 %2610  ;;  %v2608_v31 = vpop.xlane.xlu0 %2607 }
 0xce7   :  { %6315 = vpow2.f32 %v2630_v38  ;;  %v2619_v42 = vsub.f32 %v2584_v6, %v2611_v28  ;;  %v2618_v29 = vsub.f32 %v2508_v2, %v2608_v31 }
 0xce8   :  { %6317 = vpow2.f32 %v2628_v41 }
 0xce9   :  { %v6312_v33 = vpop.eup %6311  ;;  %v2634_v43 = vmul.f32 1.442695, %v2619_v42  ;;  %v2632_v44 = vmul.f32 1.442695, %v2618_v29  ;;  %v5520_v42 = vld [vmem:[%s7391_s1 + $0xa0] sm:$0xff]  ;;  %v5521_v29 = vld [vmem:[%s7391_s1 + $0xa8] sm:$0xff] }
 0xcea   :  { %v2753_v46 = vpop.permute.xlu1 %2752  ;;  %v2677_v48 = vpop.permute.xlu0 %2676  ;;  %v2645_v49 = vsel %vm178_vm2, %v6312_v33, 0.0 }
 0xceb   :  { %6319 = vpow2.f32 %v2634_v43  ;;  %5964 = vmatpush3.msra.mxu1 %v2753_v46  ;;  %2646 = vadd.xlane.f32.xlu1 %v2645_v49  ;;  %v5522_v43 = vld [vmem:[%s7391_s1 + $0xb0] sm:$0xff] }
 0xcec   :  { %6321 = vpow2.f32 %v2632_v44  ;;  %5959 = vmatpush3.msra.mxu0 %v2677_v48  ;;  %5973 = vmatprep.subr.mxu1 %v6411_v47  ;;  %v5523_v44 = vld [vmem:[%s7391_s1 + $0xb8] sm:$0xff] }
 0xced   :  { %v6314_v50 = vpop.eup %6313  ;;  %5968 = vmatprep.subr.mxu0 %v6411_v47  ;;  %v6199_v46 = vpack.c.bf16 %v5523_v44, %v5522_v43 }
 0xcee   :  { %v2642_v51 = vsel %vm178_vm2, %v6314_v50, 0.0  ;;  %v2829_v2 = vpop.permute.xlu1 %2828  ;;  %v2981_v3 = vpop.permute.xlu0 %2980 }
 0xcef   :  { %2643 = vadd.xlane.f32.xlu0 %v2642_v51 }
 0xcf1   :  { %v6316_v52 = vpop.eup %6315 }
 0xcf2   :  { %v6318_v53 = vpop.eup %6317  ;;  %v2651_v54 = vsel %vm178_vm2, %v6316_v52, 0.0  ;;  %v2905_v4 = vpop.permute.xlu1 %2904 }
 0xcf3   :  { %2652 = vadd.xlane.f32.xlu1 %v2651_v54  ;;  %v2648_v56 = vsel %vm178_vm2, %v6318_v53, 0.0 }
 0xcf4   :  { %2649 = vadd.xlane.f32.xlu0 %v2648_v56 }
 0xcf5   :  { %v6945_v57 = vpop.eup %6319 }
 0xcf6   :  { %v6947_v59 = vpop.eup %6321  ;;  %v2657_v60 = vsel %vm178_vm2, %v6945_v57, 0.0  ;;  %v3057_v6 = vpop.permute.xlu1 %3056 }
 0xcf7   :  { %2658 = vadd.xlane.f32.xlu1 %v2657_v60  ;;  %v2654_v61 = vsel %vm178_vm2, %v6947_v59, 0.0 }
 0xcf8   :  { %2655 = vadd.xlane.f32.xlu0 %v2654_v61 }
 0xd08   :  { %3208 = vrot.lane.b32.xlu1 %v6861_v0, %s6417_s29 }
 0xd0e   :  { %3132 = vrot.lane.b32.xlu0 %v6849_v34, %s6417_s29 }
 0xd1f   :  { %v2638_v5 = vpop.xlane.xlu0 %2637 }
 0xd20   :  { %6323 = vrcp.f32 %v2638_v5 }
 0xd27   :  { %v2641_v8 = vpop.xlane.xlu1 %2640 }
 0xd28   :  { %6325 = vrcp.f32 %v2641_v8 }
 0xd2a   :  { %v6324_v9 = vpop.eup %6323 }
 0xd2b   :  { %v2668_v10 = vmul.f32 %v6324_v9, %v6931_v17 }
 0xd2d   :  { %5961 = vmatmul.mubr.msk.f32.vlgmr.msra.gmra.mrb[26].mxu0 %vm178_vm2, %v2668_v10 }
 0xd2e   :  { %5969 = vmatpush3.msra.mxu0 %v2829_v2  ;;  %5970 = vmatprep.mubr.msk.f32.mxu0 %vm6412_vm1, %v6411_v47 }
 0xd2f   :  { %5978 = vmatprep.subr.mxu0 %v6411_v47 }
 0xd32   :  { %v6326_v34 = vpop.eup %6325 }
 0xd33   :  { %v2669_v0 = vmul.f32 %v6326_v34, %v6935_v19 }
 0xd35   :  { %5966 = vmatmul.mubr.msk.f32.vlgmr.msra.gmra.mrb[32].mxu1 %vm178_vm2, %v2669_v0 }
 0xd36   :  { %5974 = vmatpush3.msra.mxu1 %v2905_v4  ;;  %5975 = vmatprep.mubr.msk.f32.mxu1 %vm6412_vm1, %v6411_v47 }
 0xd37   :  { %5983 = vmatprep.subr.mxu1 %v6411_v47 }
 0xd78   :  { %v2647_v11 = vpop.xlane.xlu1 %2646 }
 0xd79   :  { %6327 = vrcp.f32 %v2647_v11 }
 0xd7c   :  { %v2644_v12 = vpop.xlane.xlu0 %2643 }
 0xd7d   :  { %6329 = vrcp.f32 %v2644_v12 }
 0xd80   :  { %v2653_v13 = vpop.xlane.xlu1 %2652 }
 0xd81   :  { %6331 = vrcp.f32 %v2653_v13  ;;  %v2650_v14 = vpop.xlane.xlu0 %2649  ;;  %v3400_v13 = vrot.slane %v6805_v7, %v6700_v55 }
 0xd82   :  { %6333 = vrcp.f32 %v2650_v14 }
 0xd83   :  { %v6328_v15 = vpop.eup %6327 }
 0xd84   :  { %v2671_v16 = vmul.f32 %v6328_v15, %v6312_v33  ;;  %v2659_v17 = vpop.xlane.xlu1 %2658  ;;  %v6195_v33 = vpack.c.bf16 %v5521_v29, %v5520_v42 }
 0xd85   :  { %6335 = vrcp.f32 %v2659_v17  ;;  %v2656_v18 = vpop.xlane.xlu0 %2655 }
 0xd86   :  { %6337 = vrcp.f32 %v2656_v18  ;;  %5976 = vmatmul.mubr.msk.f32.vlgmr.msra.gmra.mrb[34].mxu1 %vm178_vm2, %v2671_v16 }
 0xd87   :  { %v6330_v19 = vpop.eup %6329  ;;  %5984 = vmatpush3.msra.mxu1 %v3057_v6  ;;  %5985 = vmatprep.mubr.msk.f32.mxu1 %vm6412_vm1, %v6411_v47 }
 0xd88   :  { %v2670_v21 = vmul.f32 %v6330_v19, %v6314_v50  ;;  %5993 = vmatprep.subr.mxu1 %v6411_v47  ;;  %v3209_v25 = vpop.permute.xlu1 %3208 }
 0xd89   :  { %v3133_v27 = vpop.permute.xlu0 %3132 }
 0xd8a   :  { %5971 = vmatmul.mubr.msk.f32.vlgmr.msra.gmra.mrb[28].mxu0 %vm178_vm2, %v2670_v21 }
 0xd8b   :  { %v6332_v22 = vpop.eup %6331  ;;  %5979 = vmatpush3.msra.mxu0 %v2981_v3  ;;  %5980 = vmatprep.mubr.msk.f32.mxu0 %vm6412_vm1, %v6411_v47 }
 0xd8c   :  { %v6334_v23 = vpop.eup %6333  ;;  %v2673_v58 = vmul.f32 %v6332_v22, %v6316_v52  ;;  %5988 = vmatprep.subr.mxu0 %v6411_v47 }
 0xd8d   :  { %v2672_v24 = vmul.f32 %v6334_v23, %v6318_v53 }
 0xd8e   :  { %5986 = vmatmul.mubr.msk.f32.vlgmr.msra.gmra.mrb[36].mxu1 %vm178_vm2, %v2673_v58 }
 0xd8f   :  { %v6336_v26 = vpop.eup %6335  ;;  %5981 = vmatmul.mubr.msk.f32.vlgmr.msra.gmra.mrb[30].mxu0 %vm178_vm2, %v2672_v24  ;;  %5994 = vmatpush3.msra.mxu1 %v3209_v25  ;;  %v5524_v24 = vld [vmem:[%s7391_s1 + $0xc0] sm:$0xff]  ;;  %v5525_v25 = vld [vmem:[%s7391_s1 + $0xc8] sm:$0xff] }
 0xd90   :  { %v6338_v36 = vpop.eup %6337  ;;  %v2675_v1 = vmul.f32 %v6336_v26, %v6945_v57  ;;  %5989 = vmatpush3.msra.mxu0 %v3133_v27  ;;  %5990 = vmatprep.mubr.msk.f32.mxu0 %vm6412_vm1, %v6411_v47  ;;  %v6203_v26 = vpack.c.bf16 %v5525_v25, %v5524_v24  ;;  %v5526_v27 = vld [vmem:[%s7391_s1 + $0xd0] sm:$0xff] }
 0xd91   :  { %v2674_v37 = vmul.f32 %v6338_v36, %v6947_v59  ;;  %5995 = vmatprep.mubr.msk.f32.mxu1 %vm6412_vm1, %v6411_v47  ;;  %6196 = vmatprep.subr.bf16.mxu0 %v6195_v33  ;;  %v5527_v36 = vld [vmem:[%s7391_s1 + $0xd8] sm:$0xff] }
 0xd92   :  { %5996 = vmatmul.mubr.msk.f32.vlgmr.msra.gmra.mrb[38].mxu1 %vm178_vm2, %v2675_v1  ;;  %6204 = vmatprep.subr.bf16.mxu1 %v6203_v26  ;;  %v6207_v1 = vpack.c.bf16 %v5527_v36, %v5526_v27 }
 0xd93   :  { %5991 = vmatmul.mubr.msk.f32.vlgmr.msra.gmra.mrb[32].mxu0 %vm178_vm2, %v2674_v37  ;;  %6206 = vmatpush3.bf16.msra.mxu1 %v6203_v26 }
 0xd94   :  { %6198 = vmatpush3.bf16.msra.mxu0 %v6195_v33  ;;  %6208 = vmatprep.subr.bf16.mxu1 %v6207_v1 }
 0xd95   :  { %6200 = vmatprep.subr.bf16.mxu0 %v6199_v46 }
 0xd97   :  { %6210 = vmatpush3.bf16.msra.mxu1 %v6207_v1  ;;  %v5565_v1 = vld [vmem:[%s7391_s1 + $0x100] sm:$0xff] }
 0xd98   :  { %6202 = vmatpush3.bf16.msra.mxu0 %v6199_v46 }
 0xe00   :  { %v2748_v38 = vpop.f32.mrb[26].mxu0 }
 0xe01   :  { %v5962_v41 = vpop.f32.mrb[27].mxu0 }
 0xe08   :  { %v2824_v28 = vpop.f32.mrb[32].mxu1 }
 0xe09   :  { %v5967_v31 = vpop.f32.mrb[33].mxu1 }
 0xe59   :  { %v2976_v48 = vpop.f32.mrb[34].mxu1 }
 0xe5a   :  { %3288 = vrot.lane.b32.xlu1 %v2976_v48, %s6418_s11  ;;  %v5977_v49 = vpop.f32.mrb[35].mxu1 }
 0xe5d   :  { %v2900_v50 = vpop.f32.mrb[28].mxu0 }
 0xe5e   :  { %3286 = vrot.lane.b32.xlu0 %v2900_v50, %s6418_s11  ;;  %v5972_v51 = vpop.f32.mrb[29].mxu0 }
 0xe61   :  { %v3128_v52 = vpop.f32.mrb[36].mxu1 }
 0xe62   :  { %v3052_v53 = vpop.f32.mrb[30].mxu0  ;;  %3296 = vrot.lane.b32.xlu1 %v3128_v52, %s6419_s12  ;;  %v5987_v54 = vpop.f32.mrb[37].mxu1  ;;  %v3436_v52 = vrot.slane %v6805_v7, %v6733_v62 }
 0xe63   :  { %3294 = vrot.lane.b32.xlu0 %v3052_v53, %s6419_s12  ;;  %v5982_v56 = vpop.f32.mrb[31].mxu0 }
 0xe64   :  { %v3442_v56 = vrot.slane %v6805_v7, %v6736_v63 }
 0xe65   :  { %v3280_v57 = vpop.f32.mrb[38].mxu1 }
 0xe66   :  { %v3204_v59 = vpop.f32.mrb[32].mxu0  ;;  %3304 = vrot.lane.b32.xlu1 %v3280_v57, %s6420_s13  ;;  %v5997_v60 = vpop.f32.mrb[39].mxu1 }
 0xe67   :  { %3302 = vrot.lane.b32.xlu0 %v3204_v59, %s6420_s13  ;;  %v5992_v61 = vpop.f32.mrb[33].mxu0 }
 0xecc   :  { %v3289_v2 = vpop.permute.xlu1 %3288 }
 0xecd   :  { %v3309_v6 = vsel %vm178_vm2, %v2824_v28, %v3289_v2 }
 0xed0   :  { %v3287_v3 = vpop.permute.xlu0 %3286 }
 0xed1   :  { %v3308_v8 = vsel %vm178_vm2, %v2748_v38, %v3287_v3 }
 0xed4   :  { %v3297_v4 = vpop.permute.xlu1 %3296 }
 0xed5   :  { %v3295_v5 = vpop.permute.xlu0 %3294  ;;  %v3311_v9 = vsel %vm1507_vm3, %v3309_v6, %v3297_v4  ;;  %v5529_v6 = vld [vmem:[%s7391_s1 + $0xe8] sm:$0xff] }
 0xed6   :  { %v3310_v34 = vsel %vm1507_vm3, %v3308_v8, %v3295_v5  ;;  %v5528_v5 = vld [vmem:[%s7391_s1 + $0xe0] sm:$0xff] }
 0xed7   :  { %v6211_v8 = vpack.c.bf16 %v5529_v6, %v5528_v5 }
 0xed8   :  { %v3305_v10 = vpop.permute.xlu1 %3304 }
 0xed9   :  { %v3313_v0 = vsel %vm1510_vm4, %v3311_v9, %v3305_v10  ;;  %v3303_v11 = vpop.permute.xlu0 %3302  ;;  %6212 = vmatprep.subr.bf16.mxu0 %v6211_v8  ;;  %v5530_v9 = vld [vmem:[%s7391_s1 + $0xf0] sm:$0xff]  ;;  %v5531_v10 = vld [vmem:[%s7391_s1 + $0xf8] sm:$0xff] }
 0xeda   :  { %v3312_v12 = vsel %vm1510_vm4, %v3310_v34, %v3303_v11  ;;  %v6215_v34 = vpack.c.bf16 %v5531_v10, %v5530_v9 }
 0xedb   :  { %6006 = vmatprep.mubr.msk.f32.mxu0 %vm34_vm0, %v3312_v12 }
 0xedc   :  { %6007 = vmatmul.mubr.msk.f32.vlgmr.msra.gmra.mrb[34].mxu0 %vm34_vm0, %v3313_v0  ;;  %v3448_v0 = vrot.slane %v6805_v7, %v6760_v20 }
 0xedd   :  { %6214 = vmatpush3.bf16.msra.mxu0 %v6211_v8 }
 0xede   :  { %6216 = vmatprep.subr.bf16.mxu0 %v6215_v34 }
 0xee1   :  { %6218 = vmatpush3.bf16.msra.mxu0 %v6215_v34 }
 0xee2   :  { %6042 = vmatprep.subr.mxu0 %v6411_v47 }
 0xfaf   :  { %v6008_v14 = vpop.f32.mrb[34].mxu0 }
 0xfb0   :  { %v3396_v15 = vadd.f32 %v6008_v14, %v6774_v39  ;;  %v3386_v16 = vpop.f32.mrb[35].mxu0 }
 0xfb1   :  { %v3395_v17 = vadd.f32 %v3386_v16, %v6777_v40 }
 0xfb2   :  { %v7015_v18 = vadd.f32 %v3400_v13, %v3396_v15 }
 0xfb3   :  { %v7017_v19 = vadd.f32 %v3400_v13, %v3395_v17 }
 0xfb4   :  { %v3406_v21 = vsel %vm34_vm0, %v7015_v18, 0.0  ;;  %v3410_v40 = vmul.f32 %v7015_v18, %v7015_v18 }
 0xfb5   :  { %3407 = vadd.xlane.f32.xlu1 %v3406_v21  ;;  %v3403_v22 = vsel %vm34_vm0, %v7017_v19, 0.0  ;;  %v3409_v23 = vmul.f32 %v7017_v19, %v7017_v19 }
 0xfb6   :  { %3404 = vadd.xlane.f32.xlu0 %v3403_v22  ;;  %v3414_v58 = vsel %vm34_vm0, %v3410_v40, 0.0  ;;  %v3537_v22 = vrot.slane %v6805_v7, %v6769_v35 }
 0xfb7   :  { %v3411_v39 = vsel %vm34_vm0, %v3409_v23, 0.0 }
 0xfba   :  { %3412 = vadd.xlane.f32.xlu0 %v3411_v39 }
 0xfbe   :  { %3415 = vadd.xlane.f32.xlu0 %v3414_v58 }
0x1042   :  { %v3408_v41 = vpop.xlane.xlu1 %3407 }
0x1043   :  { %v3405_v37 = vpop.xlane.xlu0 %3404  ;;  %v3418_v31 = vmul.f32 0.03125, %v3408_v41  ;;  %v5567_v41 = vld [vmem:[%s7391_s1 + $0x110] sm:$0xff] }
0x1044   :  { %v3417_v38 = vmul.f32 0.03125, %v3405_v37  ;;  %v5566_v37 = vld [vmem:[%s7391_s1 + $0x108] sm:$0xff] }
0x1045   :  { %v3422_v44 = vmul.f32 %v3418_v31, %v3418_v31  ;;  %v3426_v57 = vsub.f32 %v7015_v18, %v3418_v31 }
0x1046   :  { %v3421_v42 = vmul.f32 %v3417_v38, %v3417_v38  ;;  %v3425_v51 = vsub.f32 %v7017_v19, %v3417_v38  ;;  %v6219_v38 = vpack.c.bf16 %v5566_v37, %v5565_v1 }
0x1047   :  { %v3413_v28 = vpop.xlane.xlu0 %3412 }
0x1048   :  { %v3419_v29 = vmul.f32 0.03125, %v3413_v28  ;;  %v5568_v28 = vld [vmem:[%s7391_s1 + $0x118] sm:$0xff]  ;;  %6220 = vmatprep.subr.bf16.mxu1 %v6219_v38 }
0x1049   :  { %v6223_v31 = vpack.c.bf16 %v5568_v28, %v5567_v41 }
0x104a   :  { %v3423_v33 = vsub.f32 %v3419_v29, %v3421_v42 }
0x104b   :  { %v3416_v43 = vpop.xlane.xlu0 %3415 }
0x104c   :  { %v3427_v46 = vadd.f32 1e-05, %v3423_v33  ;;  %v3420_v48 = vmul.f32 0.03125, %v3416_v43 }
0x104e   :  { %6339 = vrsqrt.f32 %v3427_v46  ;;  %v3424_v49 = vsub.f32 %v3420_v48, %v3422_v44 }
0x1050   :  { %v3428_v50 = vadd.f32 1e-05, %v3424_v49 }
0x1052   :  { %6341 = vrsqrt.f32 %v3428_v50 }
0x1058   :  { %v6340_v53 = vpop.eup %6339 }
0x1059   :  { %v3431_v54 = vmul.f32 %v6340_v53, %v3425_v51 }
0x105b   :  { %v3437_v59 = vmul.f32 %v3436_v52, %v3431_v54 }
0x105c   :  { %v6342_v60 = vpop.eup %6341 }
0x105d   :  { %v3432_v61 = vmul.f32 %v6342_v60, %v3426_v57  ;;  %v3443_v2 = vadd.f32 %v3442_v56, %v3437_v59  ;;  %v7102_v57 = vld [vmem:[%s7392_s2 + $0x10] sm:$0xff] }
0x105e   :  { %v3673_v60 = vrot.slane %v7102_v57, %v6478_v30  ;;  %v3679_v6 = vrot.slane %v7102_v57, %v6486_v32 }
0x105f   :  { %v3438_v3 = vmul.f32 %v3436_v52, %v3432_v61  ;;  %6017 = vmatprep.mubr.msk.f32.mxu1 %vm34_vm0, %v3443_v2 }
0x1061   :  { %v3444_v4 = vadd.f32 %v3442_v56, %v3438_v3 }
0x1063   :  { %6018 = vmatmul.mubr.msk.f32.vlgmr.msra.gmra.mrb[40].mxu1 %vm34_vm0, %v3444_v4 }
0x1064   :  { %6222 = vmatpush3.bf16.msra.mxu1 %v6219_v38 }
0x1065   :  { %6224 = vmatprep.subr.bf16.mxu1 %v6223_v31 }
0x1068   :  { %6226 = vmatpush3.bf16.msra.mxu1 %v6223_v31 }
0x1069   :  { %6047 = vmatprep.subr.mxu1 %v6411_v47 }
0x1136   :  { %v6019_v11 = vpop.f32.mrb[40].mxu1 }
0x1137   :  { %v3527_v12 = vadd.f32 %v6019_v11, %v3448_v0  ;;  %v3521_v13 = vpop.f32.mrb[41].mxu1 }
0x1138   :  { %v3522_v14 = vadd.f32 %v3521_v13, %v3448_v0  ;;  %v3685_v0 = vrot.slane %v7102_v57, %v6497_v45 }
0x1139   :  { %v3531_v15 = vmul.f32 0.1, %v3527_v12 }
0x113a   :  { %v3530_v16 = vmul.f32 0.1, %v3522_v14 }
0x113b   :  { %v3533_v21 = vmax.f32 %v3527_v12, %v3531_v15 }
0x113c   :  { %v3532_v17 = vmax.f32 %v3522_v14, %v3530_v16 }
0x113e   :  { %6028 = vmatprep.mubr.msk.f32.mxu0 %vm34_vm0, %v3532_v17 }
0x113f   :  { %6029 = vmatmul.mubr.msk.f32.vlgmr.msra.gmra.mrb[36].mxu0 %vm34_vm0, %v3533_v21 }
0x1140   :  { %6044 = vmatprep.mubr.msk.f32.mxu0 %vm6412_vm1, %v6411_v47 }
0x1212   :  { %v6030_v23 = vpop.f32.mrb[36].mxu0 }
0x1213   :  { %v3616_v39 = vadd.f32 %v6030_v23, %v3537_v22  ;;  %v3610_v40 = vpop.f32.mrb[37].mxu0 }
0x1214   :  { %v3611_v58 = vadd.f32 %v3610_v40, %v3537_v22 }
0x1215   :  { %v7071_v24 = vadd.f32 %v3616_v39, %v7015_v18 }
0x1216   :  { %v7074_v25 = vadd.f32 %v3611_v58, %v7017_v19 }
0x1217   :  { %v3643_v26 = vsel %vm34_vm0, %v7071_v24, 0.0  ;;  %v3647_v27 = vmul.f32 %v7071_v24, %v7071_v24 }
0x1218   :  { %3644 = vadd.xlane.f32.xlu1 %v3643_v26  ;;  %v3640_v7 = vsel %vm34_vm0, %v7074_v25, 0.0  ;;  %v3646_v36 = vmul.f32 %v7074_v25, %v7074_v25 }
0x1219   :  { %3641 = vadd.xlane.f32.xlu0 %v3640_v7  ;;  %v3651_v18 = vsel %vm34_vm0, %v3647_v27, 0.0 }
0x121a   :  { %v3648_v19 = vsel %vm34_vm0, %v3646_v36, 0.0 }
0x121c   :  { %3652 = vadd.xlane.f32.xlu1 %v3651_v18 }
0x121d   :  { %3649 = vadd.xlane.f32.xlu0 %v3648_v19 }
0x12a5   :  { %v3645_v42 = vpop.xlane.xlu1 %3644 }
0x12a6   :  { %v3655_v29 = vmul.f32 0.03125, %v3645_v42  ;;  %v3642_v33 = vpop.xlane.xlu0 %3641 }
0x12a7   :  { %v3654_v43 = vmul.f32 0.03125, %v3642_v33 }
0x12a8   :  { %v3659_v46 = vmul.f32 %v3655_v29, %v3655_v29  ;;  %v3663_v59 = vsub.f32 %v7071_v24, %v3655_v29 }
0x12a9   :  { %v3653_v44 = vpop.xlane.xlu1 %3652  ;;  %v3658_v50 = vmul.f32 %v3654_v43, %v3654_v43  ;;  %v3662_v2 = vsub.f32 %v7074_v25, %v3654_v43 }
0x12aa   :  { %v3657_v48 = vmul.f32 0.03125, %v3653_v44  ;;  %v3650_v49 = vpop.xlane.xlu0 %3649 }
0x12ab   :  { %v3656_v51 = vmul.f32 0.03125, %v3650_v49 }
0x12ac   :  { %v3661_v52 = vsub.f32 %v3657_v48, %v3659_v46 }
0x12ad   :  { %v3660_v53 = vsub.f32 %v3656_v51, %v3658_v50 }
0x12ae   :  { %v3665_v54 = vadd.f32 1e-05, %v3661_v52 }
0x12af   :  { %v3664_v56 = vadd.f32 1e-05, %v3660_v53 }
0x12b0   :  { %6343 = vrsqrt.f32 %v3665_v54 }
0x12b1   :  { %6345 = vrsqrt.f32 %v3664_v56 }
0x12ba   :  { %v6344_v61 = vpop.eup %6343 }
0x12bb   :  { %v6346_v3 = vpop.eup %6345  ;;  %v3669_v4 = vmul.f32 %v6344_v61, %v3663_v59 }
0x12bc   :  { %v3668_v5 = vmul.f32 %v6346_v3, %v3662_v2 }
0x12bd   :  { %v3675_v8 = vmul.f32 %v3673_v60, %v3669_v4 }
0x12be   :  { %v3674_v9 = vmul.f32 %v3673_v60, %v3668_v5 }
0x12bf   :  { %v3681_v34 = vadd.f32 %v3679_v6, %v3675_v8 }
0x12c0   :  { %v3680_v10 = vadd.f32 %v3679_v6, %v3674_v9 }
0x12c2   :  { %6039 = vmatprep.mubr.msk.f32.mxu1 %vm34_vm0, %v3680_v10 }
0x12c3   :  { %6040 = vmatmul.mubr.msk.f32.vlgmr.msra.gmra.mrb[42].mxu1 %vm34_vm0, %v3681_v34 }
0x12c4   :  { %6049 = vmatprep.mubr.msk.f32.mxu1 %vm6412_vm1, %v6411_v47 }
0x1396   :  { %v6041_v11 = vpop.f32.mrb[42].mxu1 }
0x1397   :  { %v7116_v12 = vadd.f32 %v6041_v11, %v3685_v0  ;;  %v3758_v13 = vpop.f32.mrb[43].mxu1 }
0x1398   :  { %v7118_v14 = vadd.f32 %v3758_v13, %v3685_v0 }
0x1399   :  { %3771 = vrot.lane.b32.xlu1 %v7116_v12, %s6413_s25 }
0x139a   :  { %3769 = vrot.lane.b32.xlu0 %v7118_v14, %s6413_s25 }
0x139d   :  { %3773 = vrot.lane.b32.xlu1 %v7118_v14, %s6414_s26 }
0x139e   :  { %3777 = vrot.lane.b32.xlu0 %v7118_v14, %s6415_s27 }
0x13a1   :  { %3775 = vrot.lane.b32.xlu1 %v7116_v12, %s6414_s26 }
0x13a2   :  { %3781 = vrot.lane.b32.xlu0 %v7118_v14, %s6416_s28 }
0x13a5   :  { %3779 = vrot.lane.b32.xlu1 %v7116_v12, %s6415_s27 }
0x13a9   :  { %3857 = vrot.lane.b32.xlu1 %v7116_v12, %s6416_s28 }
0x140b   :  { %v7136_v45 = vpop.permute.xlu1 %3771 }
0x140c   :  { %4009 = vrot.lane.b32.xlu1 %v7136_v45, %s6416_s28  ;;  %v7140_v15 = vpop.permute.xlu0 %3769 }
0x140d   :  { %3933 = vrot.lane.b32.xlu0 %v7140_v15, %s6416_s28 }
0x140f   :  { %v7144_v16 = vpop.permute.xlu1 %3773 }
0x1410   :  { %v7146_v17 = vpop.permute.xlu0 %3777 }
0x1411   :  { %4085 = vrot.lane.b32.xlu0 %v7144_v16, %s6416_s28 }
0x1413   :  { %v7150_v21 = vpop.permute.xlu1 %3775 }
0x1414   :  { %4161 = vrot.lane.b32.xlu1 %v7150_v21, %s6416_s28  ;;  %v3782_v22 = vpop.permute.xlu0 %3781 }
0x1415   :  { %4237 = vrot.lane.b32.xlu0 %v7146_v17, %s6416_s28  ;;  %6043 = vmatpush3.xpose.msk.msra.mxu0 %vm178_vm2, %v3782_v22 }
0x1416   :  { %6052 = vmatprep.subr.mxu0 %v6411_v47 }
0x1417   :  { %v7158_v23 = vpop.permute.xlu1 %3779 }
0x1418   :  { %4313 = vrot.lane.b32.xlu1 %v7158_v23, %s6416_s28  ;;  %6045 = vmatmul.mubr.msk.f32.vlgmr.msra.gmra.mrb[38].mxu0 %vm178_vm2, %v7118_v14 }
0x1419   :  { %6054 = vmatprep.mubr.msk.f32.mxu0 %vm6412_vm1, %v6411_v47 }
0x141b   :  { %v3858_v39 = vpop.permute.xlu1 %3857 }
0x141c   :  { %6048 = vmatpush3.xpose.msk.msra.mxu1 %vm178_vm2, %v3858_v39 }
0x141d   :  { %6057 = vmatprep.subr.mxu1 %v6411_v47 }
0x141f   :  { %6050 = vmatmul.mubr.msk.f32.vlgmr.msra.gmra.mrb[44].mxu1 %vm178_vm2, %v7116_v12 }
0x1420   :  { %6059 = vmatprep.mubr.msk.f32.mxu1 %vm6412_vm1, %v6411_v47 }
0x147e   :  { %v4010_v40 = vpop.permute.xlu1 %4009 }
0x147f   :  { %6058 = vmatpush3.xpose.msk.msra.mxu1 %vm178_vm2, %v4010_v40  ;;  %v3934_v58 = vpop.permute.xlu0 %3933 }
0x1480   :  { %6053 = vmatpush3.xpose.msk.msra.mxu0 %vm178_vm2, %v3934_v58  ;;  %6067 = vmatprep.subr.mxu1 %v6411_v47 }
0x1481   :  { %6062 = vmatprep.subr.mxu0 %v6411_v47 }
0x1482   :  { %6060 = vmatmul.mubr.msk.f32.vlgmr.msra.gmra.mrb[46].mxu1 %vm178_vm2, %v7136_v45 }
0x1483   :  { %6055 = vmatmul.mubr.msk.f32.vlgmr.msra.gmra.mrb[40].mxu0 %vm178_vm2, %v7140_v15  ;;  %v4086_v26 = vpop.permute.xlu0 %4085  ;;  %6069 = vmatprep.mubr.msk.f32.mxu1 %vm6412_vm1, %v6411_v47 }
0x1484   :  { %6063 = vmatpush3.xpose.msk.msra.mxu0 %vm178_vm2, %v4086_v26  ;;  %6064 = vmatprep.mubr.msk.f32.mxu0 %vm6412_vm1, %v6411_v47 }
0x1485   :  { %6072 = vmatprep.subr.mxu0 %v6411_v47 }
0x1486   :  { %v4162_v27 = vpop.permute.xlu1 %4161 }
0x1487   :  { %6065 = vmatmul.mubr.msk.f32.vlgmr.msra.gmra.mrb[42].mxu0 %vm178_vm2, %v7144_v16  ;;  %6068 = vmatpush3.xpose.msk.msra.mxu1 %vm178_vm2, %v4162_v27  ;;  %v4238_v7 = vpop.permute.xlu0 %4237 }
0x1488   :  { %6073 = vmatpush3.xpose.msk.msra.mxu0 %vm178_vm2, %v4238_v7  ;;  %6077 = vmatprep.subr.mxu1 %v6411_v47 }
0x1489   :  { %6074 = vmatprep.mubr.msk.f32.mxu0 %vm6412_vm1, %v6411_v47  ;;  %6082 = vmatprep.subr.mxu0 %v6411_v47 }
0x148a   :  { %6070 = vmatmul.mubr.msk.f32.vlgmr.msra.gmra.mrb[48].mxu1 %vm178_vm2, %v7150_v21  ;;  %v4314_v36 = vpop.permute.xlu1 %4313 }
0x148b   :  { %6075 = vmatmul.mubr.msk.f32.vlgmr.msra.gmra.mrb[44].mxu0 %vm178_vm2, %v7146_v17  ;;  %6078 = vmatpush3.xpose.msk.msra.mxu1 %vm178_vm2, %v4314_v36 }
0x148c   :  { %6079 = vmatprep.mubr.msk.f32.mxu1 %vm6412_vm1, %v6411_v47  ;;  %6087 = vmatprep.subr.mxu1 %v6411_v47 }
0x148d   :  { %6084 = vmatprep.mubr.msk.f32.mxu0 %vm6412_vm1, %v6411_v47 }
0x148e   :  { %6080 = vmatmul.mubr.msk.f32.vlgmr.msra.gmra.mrb[50].mxu1 %vm178_vm2, %v7158_v23 }
0x148f   :  { %6089 = vmatprep.mubr.msk.f32.mxu1 %vm6412_vm1, %v6411_v47 }
0x14eb   :  { %v3853_v18 = vpop.f32.mrb[38].mxu0 }
0x14ec   :  { %v6046_v19 = vpop.f32.mrb[39].mxu0  ;;  %v4389_v1 = vsel %vm178_vm2, %v3853_v18, -inf }
0x14ed   :  { %4390 = vmax.xlane.f32.xlu0 %v4389_v1 }
0x14f2   :  { %v3929_v37 = vpop.f32.mrb[44].mxu1 }
0x14f3   :  { %v6051_v38 = vpop.f32.mrb[45].mxu1  ;;  %v4392_v41 = vsel %vm178_vm2, %v3929_v37, -inf }
0x14f4   :  { %4393 = vmax.xlane.f32.xlu1 %v4392_v41 }
0x1555   :  { %v4081_v28 = vpop.f32.mrb[46].mxu1 }
0x1556   :  { %v4005_v31 = vpop.f32.mrb[40].mxu0  ;;  %v6061_v42 = vpop.f32.mrb[47].mxu1  ;;  %v4398_v29 = vsel %vm178_vm2, %v4081_v28, -inf }
0x1557   :  { %4399 = vmax.xlane.f32.xlu0 %v4398_v29  ;;  %v6056_v33 = vpop.f32.mrb[41].mxu0  ;;  %v4395_v44 = vsel %vm178_vm2, %v4005_v31, -inf }
0x155a   :  { %v4157_v43 = vpop.f32.mrb[42].mxu0 }
0x155b   :  { %4396 = vmax.xlane.f32.xlu0 %v4395_v44  ;;  %v6066_v46 = vpop.f32.mrb[43].mxu0  ;;  %v4401_v52 = vsel %vm178_vm2, %v4157_v43, -inf }
0x155d   :  { %v4233_v48 = vpop.f32.mrb[48].mxu1 }
0x155e   :  { %v6071_v49 = vpop.f32.mrb[49].mxu1  ;;  %v4309_v50 = vpop.f32.mrb[44].mxu0  ;;  %v4404_v51 = vsel %vm178_vm2, %v4233_v48, -inf }
0x155f   :  { %4405 = vmax.xlane.f32.xlu1 %v4404_v51  ;;  %4402 = vmax.xlane.f32.xlu0 %v4401_v52  ;;  %v6076_v53 = vpop.f32.mrb[45].mxu0  ;;  %v4407_v60 = vsel %vm178_vm2, %v4309_v50, -inf }
0x1561   :  { %v4385_v54 = vpop.f32.mrb[50].mxu1 }
0x1562   :  { %v6081_v56 = vpop.f32.mrb[51].mxu1  ;;  %v4410_v59 = vsel %vm178_vm2, %v4385_v54, -inf }
0x1563   :  { %4411 = vmax.xlane.f32.xlu1 %v4410_v59  ;;  %4408 = vmax.xlane.f32.xlu0 %v4407_v60 }
0x1574   :  { %4553 = vrot.lane.b32.xlu1 %v7116_v12, %s6417_s29 }
0x1578   :  { %4629 = vrot.lane.b32.xlu1 %v7140_v15, %s6417_s29 }
0x1579   :  { %4477 = vrot.lane.b32.xlu0 %v7118_v14, %s6417_s29 }
0x157a   :  { %v4391_v61 = vpop.xlane.xlu0 %4390 }
0x157b   :  { %v4413_v2 = vsub.f32 %v3853_v18, %v4391_v61 }
0x157c   :  { %4705 = vrot.lane.b32.xlu1 %v7136_v45, %s6417_s29 }
0x157d   :  { %4781 = vrot.lane.b32.xlu0 %v7144_v16, %s6417_s29  ;;  %v4421_v3 = vmul.f32 1.442695, %v4413_v2 }
0x157f   :  { %6347 = vpow2.f32 %v4421_v3 }
0x1580   :  { %4857 = vrot.lane.b32.xlu1 %v7150_v21, %s6417_s29 }
0x1581   :  { %v4394_v4 = vpop.xlane.xlu1 %4393 }
0x1582   :  { %v4414_v5 = vsub.f32 %v3929_v37, %v4394_v4 }
0x1584   :  { %v4423_v6 = vmul.f32 1.442695, %v4414_v5 }
0x1586   :  { %6349 = vpow2.f32 %v4423_v6 }
0x1589   :  { %v7228_v8 = vpop.eup %6347 }
0x158a   :  { %v4437_v9 = vsel %vm178_vm2, %v7228_v8, 0.0 }
0x1590   :  { %v7232_v10 = vpop.eup %6349 }
0x1591   :  { %v4440_v34 = vsel %vm178_vm2, %v7232_v10, 0.0 }
0x159c   :  { %4438 = vadd.xlane.f32.xlu0 %v4437_v9 }
0x15a4   :  { %4441 = vadd.xlane.f32.xlu1 %v4440_v34 }
0x15e4   :  { %v4400_v0 = vpop.xlane.xlu0 %4399 }
0x15e5   :  { %v4416_v11 = vsub.f32 %v4081_v28, %v4400_v0 }
0x15e7   :  { %v4427_v12 = vmul.f32 1.442695, %v4416_v11 }
0x15e8   :  { %v4397_v13 = vpop.xlane.xlu0 %4396 }
0x15e9   :  { %6351 = vpow2.f32 %v4427_v12  ;;  %v4415_v14 = vsub.f32 %v4005_v31, %v4397_v13 }
0x15eb   :  { %v4425_v45 = vmul.f32 1.442695, %v4415_v14 }
0x15ec   :  { %v4406_v15 = vpop.xlane.xlu1 %4405  ;;  %v4403_v16 = vpop.xlane.xlu0 %4402 }
0x15ed   :  { %6353 = vpow2.f32 %v4425_v45  ;;  %v4418_v21 = vsub.f32 %v4233_v48, %v4406_v15  ;;  %v4417_v22 = vsub.f32 %v4157_v43, %v4403_v16 }
0x15ef   :  { %v4431_v39 = vmul.f32 1.442695, %v4418_v21  ;;  %v4429_v40 = vmul.f32 1.442695, %v4417_v22 }
0x15f0   :  { %v4412_v58 = vpop.xlane.xlu1 %4411  ;;  %v4409_v26 = vpop.xlane.xlu0 %4408 }
0x15f1   :  { %6355 = vpow2.f32 %v4431_v39  ;;  %v4420_v27 = vsub.f32 %v4385_v54, %v4412_v58  ;;  %v4419_v7 = vsub.f32 %v4309_v50, %v4409_v26  ;;  %v5569_v26 = vld [vmem:[%s7391_s1 + $0x120] sm:$0xff] }
0x15f2   :  { %6357 = vpow2.f32 %v4429_v40 }
0x15f3   :  { %v6352_v36 = vpop.eup %6351  ;;  %v4435_v18 = vmul.f32 1.442695, %v4420_v27  ;;  %v4433_v19 = vmul.f32 1.442695, %v4419_v7  ;;  %v5570_v27 = vld [vmem:[%s7391_s1 + $0x128] sm:$0xff] }
0x15f4   :  { %v4554_v1 = vpop.permute.xlu1 %4553  ;;  %v4478_v37 = vpop.permute.xlu0 %4477  ;;  %v4446_v38 = vsel %vm178_vm2, %v6352_v36, 0.0  ;;  %v6227_v7 = vpack.c.bf16 %v5570_v27, %v5569_v26 }
0x15f5   :  { %6359 = vpow2.f32 %v4435_v18  ;;  %6088 = vmatpush3.msra.mxu1 %v4554_v1  ;;  %4447 = vadd.xlane.f32.xlu1 %v4446_v38 }
0x15f6   :  { %6361 = vpow2.f32 %v4433_v19  ;;  %6083 = vmatpush3.msra.mxu0 %v4478_v37  ;;  %6097 = vmatprep.subr.mxu1 %v6411_v47 }
0x15f7   :  { %v6354_v41 = vpop.eup %6353  ;;  %6092 = vmatprep.subr.mxu0 %v6411_v47 }
0x15f8   :  { %v4443_v28 = vsel %vm178_vm2, %v6354_v41, 0.0  ;;  %v4630_v49 = vpop.permute.xlu1 %4629  ;;  %v4782_v50 = vpop.permute.xlu0 %4781 }
0x15f9   :  { %4444 = vadd.xlane.f32.xlu0 %v4443_v28 }
0x15fb   :  { %v6356_v31 = vpop.eup %6355 }
0x15fc   :  { %v6358_v42 = vpop.eup %6357  ;;  %v4452_v29 = vsel %vm178_vm2, %v6356_v31, 0.0  ;;  %v4706_v51 = vpop.permute.xlu1 %4705 }
0x15fd   :  { %4453 = vadd.xlane.f32.xlu1 %v4452_v29  ;;  %v4449_v33 = vsel %vm178_vm2, %v6358_v42, 0.0 }
0x15fe   :  { %4450 = vadd.xlane.f32.xlu0 %v4449_v33 }
0x15ff   :  { %v7242_v43 = vpop.eup %6359 }
0x1600   :  { %v7244_v44 = vpop.eup %6361  ;;  %v4458_v46 = vsel %vm178_vm2, %v7242_v43, 0.0  ;;  %v4858_v53 = vpop.permute.xlu1 %4857 }
0x1601   :  { %4459 = vadd.xlane.f32.xlu1 %v4458_v46  ;;  %v4455_v48 = vsel %vm178_vm2, %v7244_v44, 0.0 }
0x1602   :  { %4456 = vadd.xlane.f32.xlu0 %v4455_v48 }
0x1612   :  { %5009 = vrot.lane.b32.xlu1 %v7158_v23, %s6417_s29 }
0x1618   :  { %4933 = vrot.lane.b32.xlu0 %v7146_v17, %s6417_s29 }
0x1629   :  { %v4439_v52 = vpop.xlane.xlu0 %4438 }
0x162a   :  { %6363 = vrcp.f32 %v4439_v52 }
0x1631   :  { %v4442_v54 = vpop.xlane.xlu1 %4441 }
0x1632   :  { %6365 = vrcp.f32 %v4442_v54 }
0x1634   :  { %v6364_v56 = vpop.eup %6363 }
0x1635   :  { %v4469_v59 = vmul.f32 %v6364_v56, %v7228_v8 }
0x1637   :  { %6085 = vmatmul.mubr.msk.f32.vlgmr.msra.gmra.mrb[46].mxu0 %vm178_vm2, %v4469_v59 }
0x1638   :  { %6093 = vmatpush3.msra.mxu0 %v4630_v49  ;;  %6094 = vmatprep.mubr.msk.f32.mxu0 %vm6412_vm1, %v6411_v47 }
0x1639   :  { %6102 = vmatprep.subr.mxu0 %v6411_v47 }
0x163c   :  { %v6366_v17 = vpop.eup %6365 }
0x163d   :  { %v4470_v23 = vmul.f32 %v6366_v17, %v7232_v10 }
0x163f   :  { %6090 = vmatmul.mubr.msk.f32.vlgmr.msra.gmra.mrb[52].mxu1 %vm178_vm2, %v4470_v23 }
0x1640   :  { %6098 = vmatpush3.msra.mxu1 %v4706_v51  ;;  %6099 = vmatprep.mubr.msk.f32.mxu1 %vm6412_vm1, %v6411_v47 }
0x1641   :  { %6107 = vmatprep.subr.mxu1 %v6411_v47 }
0x1682   :  { %v4448_v60 = vpop.xlane.xlu1 %4447 }
0x1683   :  { %6367 = vrcp.f32 %v4448_v60  ;;  %v5201_v60 = vrot.slane %v7102_v57, %v6700_v55 }
0x1686   :  { %v4445_v61 = vpop.xlane.xlu0 %4444 }
0x1687   :  { %6369 = vrcp.f32 %v4445_v61 }
0x168a   :  { %v4454_v2 = vpop.xlane.xlu1 %4453 }
0x168b   :  { %6371 = vrcp.f32 %v4454_v2  ;;  %v4451_v3 = vpop.xlane.xlu0 %4450 }
0x168c   :  { %6373 = vrcp.f32 %v4451_v3 }
0x168d   :  { %v6368_v4 = vpop.eup %6367 }
0x168e   :  { %v4472_v5 = vmul.f32 %v6368_v4, %v6352_v36  ;;  %v4460_v6 = vpop.xlane.xlu1 %4459  ;;  %v5572_v36 = vld [vmem:[%s7391_s1 + $0x138] sm:$0xff] }
0x168f   :  { %6375 = vrcp.f32 %v4460_v6  ;;  %v4457_v8 = vpop.xlane.xlu0 %4456 }
0x1690   :  { %6377 = vrcp.f32 %v4457_v8  ;;  %6100 = vmatmul.mubr.msk.f32.vlgmr.msra.gmra.mrb[54].mxu1 %vm178_vm2, %v4472_v5 }
0x1691   :  { %v6370_v9 = vpop.eup %6369  ;;  %6108 = vmatpush3.msra.mxu1 %v4858_v53  ;;  %6109 = vmatprep.mubr.msk.f32.mxu1 %vm6412_vm1, %v6411_v47 }
0x1692   :  { %v4471_v10 = vmul.f32 %v6370_v9, %v6354_v41  ;;  %6117 = vmatprep.subr.mxu1 %v6411_v47  ;;  %v5010_v13 = vpop.permute.xlu1 %5009 }
0x1693   :  { %v4934_v45 = vpop.permute.xlu0 %4933 }
0x1694   :  { %6095 = vmatmul.mubr.msk.f32.vlgmr.msra.gmra.mrb[48].mxu0 %vm178_vm2, %v4471_v10 }
0x1695   :  { %v6372_v34 = vpop.eup %6371  ;;  %6103 = vmatpush3.msra.mxu0 %v4782_v50  ;;  %6104 = vmatprep.mubr.msk.f32.mxu0 %vm6412_vm1, %v6411_v47 }
0x1696   :  { %v6374_v0 = vpop.eup %6373  ;;  %v4474_v11 = vmul.f32 %v6372_v34, %v6356_v31  ;;  %6112 = vmatprep.subr.mxu0 %v6411_v47  ;;  %v5573_v34 = vld [vmem:[%s7391_s1 + $0x140] sm:$0xff] }
0x1697   :  { %v4473_v12 = vmul.f32 %v6374_v0, %v6358_v42  ;;  %v5574_v0 = vld [vmem:[%s7391_s1 + $0x148] sm:$0xff] }
0x1698   :  { %6110 = vmatmul.mubr.msk.f32.vlgmr.msra.gmra.mrb[56].mxu1 %vm178_vm2, %v4474_v11  ;;  %v6235_v11 = vpack.c.bf16 %v5574_v0, %v5573_v34 }
0x1699   :  { %v6376_v14 = vpop.eup %6375  ;;  %6105 = vmatmul.mubr.msk.f32.vlgmr.msra.gmra.mrb[50].mxu0 %vm178_vm2, %v4473_v12  ;;  %6118 = vmatpush3.msra.mxu1 %v5010_v13  ;;  %v5575_v12 = vld [vmem:[%s7391_s1 + $0x150] sm:$0xff]  ;;  %v5576_v13 = vld [vmem:[%s7391_s1 + $0x158] sm:$0xff] }
0x169a   :  { %v6378_v15 = vpop.eup %6377  ;;  %v4476_v16 = vmul.f32 %v6376_v14, %v7242_v43  ;;  %6113 = vmatpush3.msra.mxu0 %v4934_v45  ;;  %6114 = vmatprep.mubr.msk.f32.mxu0 %vm6412_vm1, %v6411_v47  ;;  %v6239_v14 = vpack.c.bf16 %v5576_v13, %v5575_v12 }
0x169b   :  { %v4475_v21 = vmul.f32 %v6378_v15, %v7244_v44  ;;  %6119 = vmatprep.mubr.msk.f32.mxu1 %vm6412_vm1, %v6411_v47  ;;  %6228 = vmatprep.subr.bf16.mxu0 %v6227_v7  ;;  %v5571_v47 = vld [vmem:[%s7391_s1 + $0x130] sm:$0xff] }
0x169c   :  { %6120 = vmatmul.mubr.msk.f32.vlgmr.msra.gmra.mrb[58].mxu1 %vm178_vm2, %v4476_v16  ;;  %v6231_v18 = vpack.c.bf16 %v5572_v36, %v5571_v47  ;;  %6236 = vmatprep.subr.bf16.mxu1 %v6235_v11 }
0x169d   :  { %6115 = vmatmul.mubr.msk.f32.vlgmr.msra.gmra.mrb[52].mxu0 %vm178_vm2, %v4475_v21  ;;  %6238 = vmatpush3.bf16.msra.mxu1 %v6235_v11 }
0x169e   :  { %6230 = vmatpush3.bf16.msra.mxu0 %v6227_v7  ;;  %6240 = vmatprep.subr.bf16.mxu1 %v6239_v14 }
0x169f   :  { %6232 = vmatprep.subr.bf16.mxu0 %v6231_v18 }
0x16a1   :  { %6242 = vmatpush3.bf16.msra.mxu1 %v6239_v14 }
0x16a2   :  { %6234 = vmatpush3.bf16.msra.mxu0 %v6231_v18 }
0x170a   :  { %v4549_v22 = vpop.f32.mrb[46].mxu0 }
0x170b   :  { %v6086_v39 = vpop.f32.mrb[47].mxu0 }
0x1712   :  { %v4625_v40 = vpop.f32.mrb[52].mxu1 }
0x1713   :  { %v6091_v58 = vpop.f32.mrb[53].mxu1 }
0x1763   :  { %v4777_v19 = vpop.f32.mrb[54].mxu1 }
0x1764   :  { %5089 = vrot.lane.b32.xlu1 %v4777_v19, %s6418_s11  ;;  %v6101_v1 = vpop.f32.mrb[55].mxu1 }
0x1765   :  { %v5237_v1 = vrot.slane %v7102_v57, %v6733_v62  ;;  %v5577_v62 = vld [vmem:[%s7391_s1 + $0x160] sm:$0xff] }
0x1767   :  { %v4701_v37 = vpop.f32.mrb[48].mxu0 }
0x1768   :  { %5087 = vrot.lane.b32.xlu0 %v4701_v37, %s6418_s11  ;;  %v6096_v38 = vpop.f32.mrb[49].mxu0 }
0x176b   :  { %v4929_v41 = vpop.f32.mrb[56].mxu1 }
0x176c   :  { %v4853_v28 = vpop.f32.mrb[50].mxu0  ;;  %5097 = vrot.lane.b32.xlu1 %v4929_v41, %s6419_s12  ;;  %v6111_v31 = vpop.f32.mrb[57].mxu1  ;;  %v5243_v41 = vrot.slane %v7102_v57, %v6736_v63  ;;  %v5578_v63 = vld [vmem:[%s7391_s1 + $0x168] sm:$0xff] }
0x176d   :  { %5095 = vrot.lane.b32.xlu0 %v4853_v28, %s6419_s12  ;;  %v6106_v42 = vpop.f32.mrb[51].mxu0 }
0x176f   :  { %v5081_v29 = vpop.f32.mrb[58].mxu1 }
0x1770   :  { %v5005_v33 = vpop.f32.mrb[52].mxu0  ;;  %5105 = vrot.lane.b32.xlu1 %v5081_v29, %s6420_s13  ;;  %v6121_v43 = vpop.f32.mrb[59].mxu1 }
0x1771   :  { %5103 = vrot.lane.b32.xlu0 %v5005_v33, %s6420_s13  ;;  %v6116_v44 = vpop.f32.mrb[53].mxu0 }
0x17d6   :  { %v5090_v46 = vpop.permute.xlu1 %5089 }
0x17d7   :  { %v5110_v51 = vsel %vm178_vm2, %v4625_v40, %v5090_v46  ;;  %v6243_v46 = vpack.c.bf16 %v5578_v63, %v5577_v62 }
0x17d9   :  { %6244 = vmatprep.subr.bf16.mxu0 %v6243_v46 }
0x17da   :  { %v5088_v48 = vpop.permute.xlu0 %5087 }
0x17db   :  { %v5109_v52 = vsel %vm178_vm2, %v4549_v22, %v5088_v48  ;;  %v5579_v48 = vld [vmem:[%s7391_s1 + $0x170] sm:$0xff] }
0x17de   :  { %v5098_v49 = vpop.permute.xlu1 %5097 }
0x17df   :  { %v5096_v50 = vpop.permute.xlu0 %5095  ;;  %v5112_v53 = vsel %vm1507_vm3, %v5110_v51, %v5098_v49  ;;  %v5580_v49 = vld [vmem:[%s7391_s1 + $0x178] sm:$0xff]  ;;  %v5249_v51 = vrot.slane %v7102_v57, %v6760_v20 }
0x17e0   :  { %v5111_v56 = vsel %vm1507_vm3, %v5109_v52, %v5096_v50  ;;  %v6247_v50 = vpack.c.bf16 %v5580_v49, %v5579_v48 }
0x17e2   :  { %v5106_v54 = vpop.permute.xlu1 %5105 }
0x17e3   :  { %v5114_v59 = vsel %vm1510_vm4, %v5112_v53, %v5106_v54  ;;  %v5104_v17 = vpop.permute.xlu0 %5103 }
0x17e4   :  { %v5113_v23 = vsel %vm1510_vm4, %v5111_v56, %v5104_v17 }
0x17e5   :  { %6130 = vmatprep.mubr.msk.f32.mxu0 %vm34_vm0, %v5113_v23 }
0x17e6   :  { %6131 = vmatmul.mubr.msk.f32.vlgmr.msra.gmra.mrb[54].mxu0 %vm34_vm0, %v5114_v59 }
0x17e7   :  { %6246 = vmatpush3.bf16.msra.mxu0 %v6243_v46 }
0x17e8   :  { %6248 = vmatprep.subr.bf16.mxu0 %v6247_v50 }
0x17eb   :  { %6250 = vmatpush3.bf16.msra.mxu0 %v6247_v50 }
0x18b9   :  { %v6132_v61 = vpop.f32.mrb[54].mxu0 }
0x18ba   :  { %v5197_v2 = vadd.f32 %v6132_v61, %v7071_v24  ;;  %v5187_v3 = vpop.f32.mrb[55].mxu0  ;;  %v5338_v61 = vrot.slane %v7102_v57, %v6769_v35 }
0x18bb   :  { %v5196_v4 = vadd.f32 %v5187_v3, %v7074_v25 }
0x18bc   :  { %v7312_v5 = vadd.f32 %v5201_v60, %v5197_v2 }
0x18bd   :  { %v7314_v6 = vadd.f32 %v5201_v60, %v5196_v4 }
0x18be   :  { %v5207_v8 = vsel %vm34_vm0, %v7312_v5, 0.0  ;;  %v5211_v25 = vmul.f32 %v7312_v5, %v7312_v5 }
0x18bf   :  { %5208 = vadd.xlane.f32.xlu1 %v5207_v8  ;;  %v5204_v9 = vsel %vm34_vm0, %v7314_v6, 0.0  ;;  %v5210_v55 = vmul.f32 %v7314_v6, %v7314_v6 }
0x18c0   :  { %5205 = vadd.xlane.f32.xlu0 %v5204_v9  ;;  %v5215_v10 = vsel %vm34_vm0, %v5211_v25, 0.0 }
0x18c1   :  { %v5212_v24 = vsel %vm34_vm0, %v5210_v55, 0.0 }
0x18c4   :  { %5213 = vadd.xlane.f32.xlu0 %v5212_v24 }
0x18c8   :  { %5216 = vadd.xlane.f32.xlu0 %v5215_v10 }
0x194c   :  { %v5209_v16 = vpop.xlane.xlu1 %5208 }
0x194d   :  { %v5206_v45 = vpop.xlane.xlu0 %5205  ;;  %v5219_v22 = vmul.f32 0.03125, %v5209_v16 }
0x194e   :  { %v5218_v15 = vmul.f32 0.03125, %v5206_v45 }
0x194f   :  { %v5223_v27 = vmul.f32 %v5219_v22, %v5219_v22  ;;  %v5227_v28 = vsub.f32 %v7312_v5, %v5219_v22 }
0x1950   :  { %v5222_v39 = vmul.f32 %v5218_v15, %v5218_v15  ;;  %v5226_v19 = vsub.f32 %v7314_v6, %v5218_v15 }
0x1951   :  { %v5214_v21 = vpop.xlane.xlu0 %5213 }
0x1952   :  { %v5220_v40 = vmul.f32 0.03125, %v5214_v21 }
0x1954   :  { %v5224_v58 = vsub.f32 %v5220_v40, %v5222_v39  ;;  %v5614_v40 = vld [vmem:[%s7392_s2 + $0x18] sm:$0xff]  ;;  %s6387_s2 = scalar_lea.vmem %s5474_s10, 256 }
0x1955   :  { %v5217_v26 = vpop.xlane.xlu0 %5216  ;;  %p6388_p0 = scmp.ne.s32.totalorder %s5474_s10, %s6387_s2  ;;  %p6393_p2 = scmp.lt.s32.totalorder %s6387_s2, %s6387_s2 }
0x1956   :  { %v5228_v7 = vadd.f32 1e-05, %v5224_v58  ;;  %v5221_v47 = vmul.f32 0.03125, %v5217_v26  ;;  %v5457_v26 = vrot.slane %v5614_v40, %v6478_v30 }
0x1957   :  { %p6394_p3 = por %p6393_p2, %p6392_p1 }
0x1958   :  { %6379 = vrsqrt.f32 %v5228_v7  ;;  %v5225_v36 = vsub.f32 %v5221_v47, %v5223_v27 }
0x1959   :  { %p6395_p4 = pnand %p6394_p3, %p6388_p0 }
0x195a   :  { %v5229_v18 = vadd.f32 1e-05, %v5225_v36 }
0x195c   :  { %6381 = vrsqrt.f32 %v5229_v18  ;;  %v5463_v18 = vrot.slane %v5614_v40, %v6486_v32 }
0x1962   :  { %v6380_v37 = vpop.eup %6379 }
0x1963   :  { %v5232_v38 = vmul.f32 %v6380_v37, %v5226_v19 }
0x1965   :  { %v5238_v31 = vmul.f32 %v5237_v1, %v5232_v38 }
0x1966   :  { %v6382_v42 = vpop.eup %6381 }
0x1967   :  { %v5233_v29 = vmul.f32 %v6382_v42, %v5227_v28  ;;  %v5244_v33 = vadd.f32 %v5243_v41, %v5238_v31 }
0x1969   :  { %v5239_v43 = vmul.f32 %v5237_v1, %v5233_v29  ;;  %6141 = vmatprep.mubr.msk.f32.mxu1 %vm34_vm0, %v5244_v33 }
0x196b   :  { %v5245_v44 = vadd.f32 %v5243_v41, %v5239_v43 }
0x196d   :  { %6142 = vmatmul.mubr.msk.f32.vlgmr.msra.gmra.mrb[60].mxu1 %vm34_vm0, %v5245_v44 }
0x1a40   :  { %v6143_v52 = vpop.f32.mrb[60].mxu1 }
0x1a41   :  { %v5328_v53 = vadd.f32 %v6143_v52, %v5249_v51  ;;  %v5322_v54 = vpop.f32.mrb[61].mxu1 }
0x1a42   :  { %v5323_v56 = vadd.f32 %v5322_v54, %v5249_v51 }
0x1a43   :  { %v5332_v59 = vmul.f32 0.1, %v5328_v53 }
0x1a44   :  { %v5331_v17 = vmul.f32 0.1, %v5323_v56 }
0x1a45   :  { %v5334_v60 = vmax.f32 %v5328_v53, %v5332_v59 }
0x1a46   :  { %v5333_v23 = vmax.f32 %v5323_v56, %v5331_v17 }
0x1a48   :  { %6152 = vmatprep.mubr.msk.f32.mxu0 %vm34_vm0, %v5333_v23 }
0x1a49   :  { %6153 = vmatmul.mubr.msk.f32.vlgmr.msra.gmra.mrb[56].mxu0 %vm34_vm0, %v5334_v60 }
0x1b1c   :  { %v6154_v2 = vpop.f32.mrb[56].mxu0 }
0x1b1d   :  { %v5417_v3 = vadd.f32 %v6154_v2, %v5338_v61  ;;  %v5411_v4 = vpop.f32.mrb[57].mxu0 }
0x1b1e   :  { %v5412_v8 = vadd.f32 %v5411_v4, %v5338_v61 }
0x1b1f   :  { %v5421_v20 = vadd.f32 %v5417_v3, %v7312_v5 }
0x1b20   :  { %v5420_v9 = vadd.f32 %v5412_v8, %v7314_v6 }
0x1b21   :  { %v5427_v55 = vsel %vm34_vm0, %v5421_v20, 0.0  ;;  %v5431_v24 = vmul.f32 %v5421_v20, %v5421_v20 }
0x1b22   :  { %5428 = vadd.xlane.f32.xlu1 %v5427_v55  ;;  %v5424_v25 = vsel %vm34_vm0, %v5420_v9, 0.0  ;;  %v5430_v10 = vmul.f32 %v5420_v9, %v5420_v9 }
0x1b23   :  { %5425 = vadd.xlane.f32.xlu0 %v5424_v25  ;;  %v5435_v34 = vsel %vm34_vm0, %v5431_v24, 0.0 }
0x1b24   :  { %v5432_v35 = vsel %vm34_vm0, %v5430_v10, 0.0 }
0x1b26   :  { %5436 = vadd.xlane.f32.xlu1 %v5435_v34 }
0x1b27   :  { %5433 = vadd.xlane.f32.xlu0 %v5432_v35 }
0x1baf   :  { %v5429_v57 = vpop.xlane.xlu1 %5428 }
0x1bb0   :  { %v5439_v0 = vmul.f32 0.03125, %v5429_v57  ;;  %v5426_v11 = vpop.xlane.xlu0 %5425 }
0x1bb1   :  { %v5438_v5 = vmul.f32 0.03125, %v5426_v11 }
0x1bb2   :  { %v5443_v6 = vmul.f32 %v5439_v0, %v5439_v0  ;;  %v5447_v58 = vsub.f32 %v5421_v20, %v5439_v0 }
0x1bb3   :  { %v5437_v12 = vpop.xlane.xlu1 %5436  ;;  %v5442_v45 = vmul.f32 %v5438_v5, %v5438_v5  ;;  %v5446_v7 = vsub.f32 %v5420_v9, %v5438_v5 }
0x1bb4   :  { %v5441_v13 = vmul.f32 0.03125, %v5437_v12  ;;  %v5434_v14 = vpop.xlane.xlu0 %5433 }
0x1bb5   :  { %v5440_v15 = vmul.f32 0.03125, %v5434_v14 }
0x1bb6   :  { %v5445_v16 = vsub.f32 %v5441_v13, %v5443_v6 }
0x1bb7   :  { %v5444_v21 = vsub.f32 %v5440_v15, %v5442_v45 }
0x1bb8   :  { %v5449_v22 = vadd.f32 1e-05, %v5445_v16 }
0x1bb9   :  { %v5448_v39 = vadd.f32 1e-05, %v5444_v21 }
0x1bba   :  { %6383 = vrsqrt.f32 %v5449_v22 }
0x1bbb   :  { %6385 = vrsqrt.f32 %v5448_v39 }
0x1bc4   :  { %v6384_v27 = vpop.eup %6383 }
0x1bc5   :  { %v6386_v47 = vpop.eup %6385  ;;  %v5453_v36 = vmul.f32 %v6384_v27, %v5447_v58 }
0x1bc6   :  { %v5452_v19 = vmul.f32 %v6386_v47, %v5446_v7 }
0x1bc7   :  { %v5459_v1 = vmul.f32 %v5457_v26, %v5453_v36 }
0x1bc8   :  { %v5458_v37 = vmul.f32 %v5457_v26, %v5452_v19 }
0x1bc9   :  { %v5465_v38 = vadd.f32 %v5463_v18, %v5459_v1 }
0x1bca   :  { %v5464_v41 = vadd.f32 %v5463_v18, %v5458_v37 }
0x1bcb   :  { %5467 = vst.msk [vmem:[#allocation2 + $0x8] sm:$0xff] %vm34_vm0, %v5465_v38 }
0x1bcc   :  { %5466 = vst.msk [vmem:[#allocation2] sm:$0xff] %vm34_vm0, %v5464_v41 }
0x1bcd   :  { %6398 = shalt.err (!%p6395_p4)
}
0x1bce   :  { %s6399_s27 = scalar_lea.hbm %s7393_s3, 256 }
0x1bcf   :  { %p6400_p5 = scmp.ne.s32.totalorder %s7393_s3, %s6399_s27  ;;  %p6403_p6 = scmp.lt.u32.totalorder %s6399_s27, %s7393_s3 }
0x1bd1   :  { %p6405_p7 = pnand %p6403_p6, %p6400_p5 }
0x1bd3   :  { %6408 = shalt.err (!%p6405_p7)
}
0x1bd4   :  { %s6422_s0 = smov 128  }
0x1bd5   :  { %5479 = dma.vmem_to_hbm [thread:$0]  %s5474_s10, 256, %s7393_s3, [#allocation3], %s6422_s0, %s6422_s0, %s6418_s11  }
0x1bd6   :  { %6409 = dma.done.wait [#allocation3], 256  }
0x1bd7   :  { %6410 = vsyncadd [#allocation3], 4294967040 }
0x1bd8   :  { %5483 = vsyncpa [#allocation3], 1 }

</bundles_post_ra>
